<compile_context>
chip_gen: v7x
topology: tpu7x:2x2x1
jax: 0.10.0
libtpu: 0.0.40
codegen_flags: <defaults>
</compile_context>

<pallas_src>
import functools

import jax
import jax.numpy as jnp
from jax.experimental import pallas as pl
from jax.experimental.pallas import tpu as pltpu

EPS = 1e-5      # PyTorch BatchNorm2d default eps
_LANE = 128     # TPU lane width -> Cout padding / column-tile size


def _round_up(x, m):
    return (x + m - 1) // m * m


def _vmem_limit_bytes():
    """Per-generation VMEM budget with headroom under physical capacity."""
    try:
        cap = pltpu.get_tpu_info().vmem_capacity_bytes
    except Exception:
        cap = None
    if cap is None or cap <= 64 * 1024 * 1024:   # v7x (64 MiB) or unknown
        return 40 * 1024 * 1024
    return 96 * 1024 * 1024                      # v5e / v6e (128 MiB physical)


# ----------------------------------------------------------------------------
# Kernel: per (image, Cout-column-tile) conv via KH matmuls with K = KW*Cin,
#         plus masked per-channel partial BatchNorm statistics.
# ----------------------------------------------------------------------------
def _conv_stats_kernel(xc_ref, w_ref, y_ref, stat_ref, *, n_anchor, wp, wo, kh):
    """One (batch image, Cout tile).

    xc_ref:   (P2, KW*Cin)      bf16  kx-folded, spatially padded input slab
    w_ref:    (KH, KW*Cin, TCN) bf16  per-ky weight matrices (Cout tile)
    y_ref:    (A, TCN)          bf16  pre-BN conv output (anchor-flattened)
    stat_ref: (2, TCN)          f32   row 0: sum(y), row 1: sum(y*y) over valid rows
    """
    a = n_anchor
    # KH matmuls, each contracting over KW*Cin; partial sums stay in registers /
    # compiler temporaries — no per-tap VMEM scratch read-modify-write.
    acc = jnp.dot(xc_ref[0:a, :], w_ref[0], preferred_element_type=jnp.float32)
    for ky in range(1, kh):
        s = ky * wp                               # multiple of 16 -> aligned slice
        acc += jnp.dot(xc_ref[s:s + a, :], w_ref[ky],
                       preferred_element_type=jnp.float32)

    y_ref[...] = acc.astype(y_ref.dtype)          # bf16 store (stats keep f32 acc)

    # Valid-anchor mask built in-kernel (anchor column < Wo); junk anchors are
    # excluded from the statistics and sliced off in the glue epilogue.
    col = jax.lax.broadcasted_iota(jnp.int32, acc.shape, 0) % wp
    ym = jnp.where(col < wo, acc, 0.0)
    stat_ref[0:1, :] = jnp.sum(ym, axis=0, keepdims=True)
    stat_ref[1:2, :] = jnp.sum(ym * ym, axis=0, keepdims=True)


# ----------------------------------------------------------------------------
# Conv2DNormed forward
# ----------------------------------------------------------------------------
def conv2d_normed(x_nchw, weight_oihw, gamma, beta, *, padding=(0, 0)):
    """Conv2d(bias=False, stride=1) + BatchNorm2d (training-mode batch stats).

    x_nchw:      (B, Cin, H, W) float32
    weight_oihw: (Cout, Cin, KH, KW) float32
    gamma, beta: (Cout,) BatchNorm affine parameters
    """
    # TODO(synk): stride/dilation/groups != 1 and the InstanceNorm / LayerNorm /
    # GroupNorm branches of get_norm() are not implemented in the Pallas path.
    B, Cin, H, W = x_nchw.shape
    Cout, Cin_w, KH, KW = weight_oihw.shape
    assert Cin_w == Cin, "groups != 1 not supported"
    ph, pw = padding

    Hp = H + 2 * ph
    Wr = _round_up(W + 2 * pw, 16)        # width padded so ky*Wr is sublane-aligned (bf16)
    Ho = H + 2 * ph - KH + 1
    Wo = W + 2 * pw - KW + 1
    A = (Ho - 1) * Wr + Wo                # contiguous anchors; columns >= Wo are junk
    P = Hp * Wr
    P2 = P - KW + 1                       # rows of the kx-folded slab
    KWC = KW * Cin
    Cp = _round_up(Cout, _LANE)           # lane-dense output channels
    TCN = _LANE
    NCN = Cp // TCN

    # ---- glue: NCHW -> flattened, padded NHWC slab with kx folded into channels
    # TODO(synk): accept NHWC input to skip this transpose when the caller allows.
    x = jnp.transpose(x_nchw, (0, 2, 3, 1)).astype(jnp.float32)
    xp = jnp.pad(x, ((0, 0), (ph, ph), (pw, Wr - W - pw), (0, 0)))
    xf = xp.reshape(B, P, Cin)
    xcat = jnp.concatenate([xf[:, kx:kx + P2, :] for kx in range(KW)],
                           axis=-1).astype(jnp.bfloat16)          # (B, P2, KW*Cin)

    # Weights restructured to (KH, KW*Cin, Cp): w2[ky, kx*Cin + c, o] = w[o, c, ky, kx]
    w = jnp.transpose(weight_oihw, (2, 3, 1, 0)).reshape(KH, KWC, Cout)
    w = jnp.pad(w, ((0, 0), (0, 0), (0, Cp - Cout))).astype(jnp.bfloat16)

    kernel = functools.partial(_conv_stats_kernel,
                               n_anchor=A, wp=Wr, wo=Wo, kh=KH)

    # ---- single Pallas pass: conv + per-(image, channel) sum / sumsq
    y_all, stats = pl.pallas_call(
        kernel,
        grid=(B, NCN),
        in_specs=[
            pl.BlockSpec((None, P2, KWC), lambda b, j: (b, 0, 0)),
            # When NCN == 1 this block index is constant across the grid; its
            # double-buffer cost is only KH*KWC*TCN*2 bytes at these widths.
            pl.BlockSpec((KH, KWC, TCN), lambda b, j: (0, 0, j)),
        ],
        out_specs=[
            pl.BlockSpec((None, A, TCN), lambda b, j: (b, 0, j)),
            pl.BlockSpec((None, 2, TCN), lambda b, j: (b, 0, j)),
        ],
        out_shape=[
            jax.ShapeDtypeStruct((B, A, Cp), jnp.bfloat16),
            jax.ShapeDtypeStruct((B, 2, Cp), jnp.float32),
        ],
        compiler_params=pltpu.CompilerParams(
            dimension_semantics=("parallel", "parallel"),
            vmem_limit_bytes=_vmem_limit_bytes()),
    )(xcat, w)

    # ---- glue: global (N,H,W) BatchNorm statistics (tiny f32 reduction)
    cnt = jnp.float32(B * Ho * Wo)
    ssum = jnp.sum(stats[:, 0, :Cout], axis=0)
    ssq = jnp.sum(stats[:, 1, :Cout], axis=0)
    mean = ssum / cnt
    var = jnp.maximum(ssq / cnt - mean * mean, 0.0)    # biased var (training mode)
    scale = gamma.astype(jnp.float32) * jax.lax.rsqrt(var + EPS)
    shift = beta.astype(jnp.float32) - mean * scale

    # ---- glue epilogue: BN apply fused with the slice/pad/reshape/transpose pass
    y = y_all[:, :, :Cout].astype(jnp.float32)
    y = y * scale.reshape(1, 1, Cout) + shift.reshape(1, 1, Cout)
    y = jnp.pad(y, ((0, 0), (0, Ho * Wr - A), (0, 0)))
    y = y.reshape(B, Ho, Wr, Cout)[:, :, :Wo, :]
    return jnp.transpose(y, (0, 3, 1, 2))


# ----------------------------------------------------------------------------
# Pure-JAX reference (same bf16 operand rounding as the kernel path; the kernel
# additionally stores the conv output in bf16, hence the slightly looser bound).
# ----------------------------------------------------------------------------
def _reference(x_nchw, weight_oihw, gamma, beta, padding):
    ph, pw = padding
    xb = x_nchw.astype(jnp.bfloat16).astype(jnp.float32)
    wb = weight_oihw.astype(jnp.bfloat16).astype(jnp.float32)
    y = jax.lax.conv_general_dilated(
        xb, wb, window_strides=(1, 1), padding=((ph, ph), (pw, pw)),
        dimension_numbers=("NCHW", "OIHW", "NCHW"),
        precision=jax.lax.Precision.HIGHEST)
    mean = jnp.mean(y, axis=(0, 2, 3), keepdims=True)
    var = jnp.mean((y - mean) ** 2, axis=(0, 2, 3), keepdims=True)
    yn = (y - mean) * jax.lax.rsqrt(var + EPS)
    return yn * gamma.reshape(1, -1, 1, 1) + beta.reshape(1, -1, 1, 1)


if __name__ == "__main__":
    B, Cin, H, W = 2, 4, 16, 16
    Cout, KH, KW, pad = 8, 3, 3, 1

    key = jax.random.PRNGKey(0)
    kx, kw_, kg, kb = jax.random.split(key, 4)
    x = jax.random.normal(kx, (B, Cin, H, W), jnp.float32)
    weight = 0.1 * jax.random.normal(kw_, (Cout, Cin, KH, KW), jnp.float32)
    gamma = 1.0 + 0.1 * jax.random.normal(kg, (Cout,), jnp.float32)
    beta = 0.1 * jax.random.normal(kb, (Cout,), jnp.float32)

    fwd = jax.jit(functools.partial(conv2d_normed, padding=(pad, pad)))
    out = fwd(x, weight, gamma, beta)
    jax.block_until_ready(out)

    assert out.shape == (B, Cout, H, W)
    assert bool(jnp.all(jnp.isfinite(out)))

    ref = _reference(x, weight, gamma, beta, (pad, pad))
    max_err = float(jnp.max(jnp.abs(out - ref)))
    # bf16 conv intermediate => ~0.01 worst-case abs error after normalization.
    assert max_err < 3e-2, f"max abs error vs reference: {max_err}"
    print("KERNEL_OK")
</pallas_src>

<mosaic_0001>
module attributes {stable_mosaic.version = 11 : i64} {
  func.func @_conv_stats_kernel(%arg0: i32, %arg1: i32, %arg2: memref<1x574x12xbf16, #tpu.memory_space<vmem>>, %arg3: memref<3x12x128xbf16, #tpu.memory_space<vmem>>, %arg4: memref<1x496x128xbf16, #tpu.memory_space<vmem>>, %arg5: memref<1x2x128xf32, #tpu.memory_space<vmem>>) attributes {dimension_semantics = [#tpu.dimension_semantics<parallel>, #tpu.dimension_semantics<parallel>], iteration_bounds = array<i64: 2, 1>, scalar_prefetch = 0 : i64, scratch_operands = 0 : i64, tpu.core_type = #tpu.core_type<tc>, window_params = [{transform_indices = @transform_0, window_bounds = array<i64: 1, 574, 12>}, {transform_indices = @transform_1, window_bounds = array<i64: 3, 12, 128>}, {transform_indices = @transform_2, window_bounds = array<i64: 1, 496, 128>}, {transform_indices = @transform_3, window_bounds = array<i64: 1, 2, 128>}]} {
    %c0 = arith.constant 0 : index
    %c0_0 = arith.constant 0 : index
    %c0_1 = arith.constant 0 : index
    %0 = vector.load %arg2[%c0, %c0_0, %c0_1] : memref<1x574x12xbf16, #tpu.memory_space<vmem>>, vector<1x496x12xbf16>
    %1 = vector.shape_cast %0 : vector<1x496x12xbf16> to vector<496x12xbf16>
    %c0_2 = arith.constant 0 : index
    %c0_3 = arith.constant 0 : index
    %c0_4 = arith.constant 0 : index
    %2 = vector.load %arg3[%c0_2, %c0_3, %c0_4] : memref<3x12x128xbf16, #tpu.memory_space<vmem>>, vector<1x12x128xbf16>
    %3 = vector.shape_cast %2 : vector<1x12x128xbf16> to vector<12x128xbf16>
    %cst = arith.constant dense<0.000000e+00> : vector<496x128xf32>
    %4 = tpu.matmul %1, %3, %cst {dimension_numbers = #tpu.dot_dimension_numbers<[1], [0], [0], [1], [0, 0, 1, 1], [], []>} : vector<496x12xbf16>, vector<12x128xbf16>, vector<496x128xf32> -> vector<496x128xf32>
    %c0_5 = arith.constant 0 : index
    %c32 = arith.constant 32 : index
    %c0_6 = arith.constant 0 : index
    %5 = vector.load %arg2[%c0_5, %c32, %c0_6] : memref<1x574x12xbf16, #tpu.memory_space<vmem>>, vector<1x496x12xbf16>
    %6 = vector.shape_cast %5 : vector<1x496x12xbf16> to vector<496x12xbf16>
    %c1 = arith.constant 1 : index
    %c0_7 = arith.constant 0 : index
    %c0_8 = arith.constant 0 : index
    %7 = vector.load %arg3[%c1, %c0_7, %c0_8] : memref<3x12x128xbf16, #tpu.memory_space<vmem>>, vector<1x12x128xbf16>
    %8 = vector.shape_cast %7 : vector<1x12x128xbf16> to vector<12x128xbf16>
    %cst_9 = arith.constant dense<0.000000e+00> : vector<496x128xf32>
    %9 = tpu.matmul %6, %8, %cst_9 {dimension_numbers = #tpu.dot_dimension_numbers<[1], [0], [0], [1], [0, 0, 1, 1], [], []>} : vector<496x12xbf16>, vector<12x128xbf16>, vector<496x128xf32> -> vector<496x128xf32>
    %10 = arith.addf %4, %9 : vector<496x128xf32>
    %c0_10 = arith.constant 0 : index
    %c64 = arith.constant 64 : index
    %c0_11 = arith.constant 0 : index
    %11 = vector.load %arg2[%c0_10, %c64, %c0_11] : memref<1x574x12xbf16, #tpu.memory_space<vmem>>, vector<1x496x12xbf16>
    %12 = vector.shape_cast %11 : vector<1x496x12xbf16> to vector<496x12xbf16>
    %c2 = arith.constant 2 : index
    %c0_12 = arith.constant 0 : index
    %c0_13 = arith.constant 0 : index
    %13 = vector.load %arg3[%c2, %c0_12, %c0_13] : memref<3x12x128xbf16, #tpu.memory_space<vmem>>, vector<1x12x128xbf16>
    %14 = vector.shape_cast %13 : vector<1x12x128xbf16> to vector<12x128xbf16>
    %cst_14 = arith.constant dense<0.000000e+00> : vector<496x128xf32>
    %15 = tpu.matmul %12, %14, %cst_14 {dimension_numbers = #tpu.dot_dimension_numbers<[1], [0], [0], [1], [0, 0, 1, 1], [], []>} : vector<496x12xbf16>, vector<12x128xbf16>, vector<496x128xf32> -> vector<496x128xf32>
    %16 = arith.addf %10, %15 : vector<496x128xf32>
    %17 = arith.truncf %16 : vector<496x128xf32> to vector<496x128xbf16>
    %c0_15 = arith.constant 0 : index
    %c0_16 = arith.constant 0 : index
    %c0_17 = arith.constant 0 : index
    %18 = vector.load %arg4[%c0_15, %c0_16, %c0_17] : memref<1x496x128xbf16, #tpu.memory_space<vmem>>, vector<1x496x128xbf16>
    %19 = vector.shape_cast %18 : vector<1x496x128xbf16> to vector<496x128xbf16>
    %20 = vector.shape_cast %17 : vector<496x128xbf16> to vector<1x496x128xbf16>
    tpu.vector_store %arg4[%c0_15, %c0_16, %c0_17], %20 {strides = array<i32>} : memref<1x496x128xbf16, #tpu.memory_space<vmem>>, vector<1x496x128xbf16>,
    %21 = tpu.iota {dimensions = array<i32: 0>} : vector<496x128xi32>
    %c32_i32 = arith.constant 32 : i32
    %c0_i32 = arith.constant 0 : i32
    %22 = arith.cmpi eq, %c32_i32, %c0_i32 : i32
    %c1_i32 = arith.constant 1 : i32
    %23 = arith.select %22, %c1_i32, %c32_i32 : i32
    %24 = vector.broadcast %23 : i32 to vector<496x128xi32>
    %25 = arith.remsi %21, %24 : vector<496x128xi32>
    %c0_i32_18 = arith.constant 0 : i32
    %26 = vector.broadcast %c0_i32_18 : i32 to vector<496x128xi32>
    %27 = arith.cmpi ne, %25, %26 : vector<496x128xi32>
    %c0_i32_19 = arith.constant 0 : i32
    %28 = vector.broadcast %c0_i32_19 : i32 to vector<496x128xi32>
    %29 = arith.cmpi slt, %25, %28 : vector<496x128xi32>
    %c0_i32_20 = arith.constant 0 : i32
    %30 = arith.cmpi slt, %23, %c0_i32_20 : i32
    %31 = vector.broadcast %30 : i1 to vector<496x128xi1>
    %32 = vector.broadcast %31 : vector<496x128xi1> to vector<496x128xi1>
    %33 = arith.xori %29, %32 : vector<496x128xi1>
    %34 = arith.andi %33, %27 : vector<496x128xi1>
    %35 = vector.broadcast %23 : i32 to vector<496x128xi32>
    %36 = arith.addi %25, %35 : vector<496x128xi32>
    %37 = arith.select %34, %36, %25 : vector<496x128xi1>, vector<496x128xi32>
    %c16_i32 = arith.constant 16 : i32
    %38 = vector.broadcast %c16_i32 : i32 to vector<496x128xi32>
    %39 = arith.cmpi slt, %37, %38 : vector<496x128xi32>
    %cst_21 = arith.constant 0.000000e+00 : f32
    %40 = vector.broadcast %cst_21 : f32 to vector<496x128xf32>
    %41 = arith.select %39, %16, %40 : vector<496x128xi1>, vector<496x128xf32>
    %cst_22 = arith.constant dense<0.000000e+00> : vector<128xf32>
    %42 = vector.multi_reduction <add>, %41, %cst_22 [0] : vector<496x128xf32> to vector<128xf32>
    %43 = vector.shape_cast %42 : vector<128xf32> to vector<1x128xf32>
    %c0_23 = arith.constant 0 : index
    %c0_24 = arith.constant 0 : index
    %c0_25 = arith.constant 0 : index
    %44 = vector.load %arg5[%c0_23, %c0_24, %c0_25] : memref<1x2x128xf32, #tpu.memory_space<vmem>>, vector<1x1x128xf32>
    %45 = vector.shape_cast %44 : vector<1x1x128xf32> to vector<1x128xf32>
    %46 = vector.shape_cast %43 : vector<1x128xf32> to vector<1x1x128xf32>
    tpu.vector_store %arg5[%c0_23, %c0_24, %c0_25], %46 {strides = array<i32>} : memref<1x2x128xf32, #tpu.memory_space<vmem>>, vector<1x1x128xf32>,
    %47 = arith.mulf %41, %41 : vector<496x128xf32>
    %cst_26 = arith.constant dense<0.000000e+00> : vector<128xf32>
    %48 = vector.multi_reduction <add>, %47, %cst_26 [0] : vector<496x128xf32> to vector<128xf32>
    %49 = vector.shape_cast %48 : vector<128xf32> to vector<1x128xf32>
    %c0_27 = arith.constant 0 : index
    %c1_28 = arith.constant 1 : index
    %c0_29 = arith.constant 0 : index
    %50 = vector.load %arg5[%c0_27, %c1_28, %c0_29] : memref<1x2x128xf32, #tpu.memory_space<vmem>>, vector<1x1x128xf32>
    %51 = vector.shape_cast %50 : vector<1x1x128xf32> to vector<1x128xf32>
    %52 = vector.shape_cast %49 : vector<1x128xf32> to vector<1x1x128xf32>
    tpu.vector_store %arg5[%c0_27, %c1_28, %c0_29], %52 {strides = array<i32>} : memref<1x2x128xf32, #tpu.memory_space<vmem>>, vector<1x1x128xf32>,
    return
  }
  func.func @transform_0(%arg0: i32, %arg1: i32) -> (i32, i32, i32) {
    %c0_i32 = arith.constant 0 : i32
    %c0_i32_0 = arith.constant 0 : i32
    %c0_i32_1 = arith.constant 0 : i32
    return %arg0, %c0_i32, %c0_i32_0 : i32, i32, i32
  }
  func.func @transform_1(%arg0: i32, %arg1: i32) -> (i32, i32, i32) {
    %c0_i32 = arith.constant 0 : i32
    %c0_i32_0 = arith.constant 0 : i32
    %c0_i32_1 = arith.constant 0 : i32
    return %c0_i32, %c0_i32_0, %arg1 : i32, i32, i32
  }
  func.func @transform_2(%arg0: i32, %arg1: i32) -> (i32, i32, i32) {
    %c0_i32 = arith.constant 0 : i32
    %c0_i32_0 = arith.constant 0 : i32
    return %arg0, %c0_i32, %arg1 : i32, i32, i32
  }
  func.func @transform_3(%arg0: i32, %arg1: i32) -> (i32, i32, i32) {
    %c0_i32 = arith.constant 0 : i32
    %c0_i32_0 = arith.constant 0 : i32
    return %arg0, %c0_i32, %arg1 : i32, i32, i32
  }
}

</mosaic_0001>

<bundles_post_ra>
// kernel: conv2d_normed.1
= control target key start
LH: loop header
LB: loop body
LE: loop exit
PB: predicated region body
PF: predicated region fallthrough
CT: control target
= control target key end

     0   :  { %s4667_s12 = smov 0   ;;  %s4669_s13 = smov 0   ;;  %s5258_s0 = inlined_call_operand.vmem [shape: bf16[2,574,12], index: 0, kind: input, shape index: {}]   ;;  %s5259_s1 = inlined_call_operand.vmem [shape: bf16[3,12,128], index: 1, kind: input, shape index: {}]   ;;  %s5260_s2 = inlined_call_operand.vmem [shape: bf16[2,496,128], index: 2, kind: output, shape index: {0}]   ;;  %s5261_s3 = inlined_call_operand.vmem [shape: f32[2,2,128], index: 3, kind: output, shape index: {1}]  }
   0x1   :  { %s4671_s14 = smov 0  }
   0x2 LB: > { %s26_s15 = sadd.s32 1, %s4639_s13  ;;  %p3385_p0 = scmp.ge.s32.totalorder %s4643_s14, 1  ;;  %s4643_s14 = sphi %s4671_s14, %s14_s14   ;;  %s4639_s13 = sphi %s4669_s13, %s5263_s13   ;;  %s4635_s12 = sphi %s4667_s12, %s5262_s12  }
   0x3   : > { %p28_p1 = scmp.ge.s32.totalorder %s26_s15, 2  ;;  %p165_p2 = scmp.lt.s32.totalorder %s4643_s14, 3 }
   0x5   : > { %s5265_s15 = smov (%p28_p1, %s26_s15), 0  ;;  %p166_p3 = pnand %p3385_p0, %p165_p2 }
   0x6   : > { %vm553_vm0 = vcmask (!%p166_p3), 1045504   ;;  %v4645_v0 = vmov (!%p166_p3), 0.0   ;;  %v4554_v1 = vld [vmem:[%s5259_s1] sm:$0x3f] (!%p166_p3)   ;;  %v4555_v2 = vld [vmem:[%s5259_s1 + $0x8] sm:$0x3f] (!%p166_p3)  }
   0x7   : > { %169 = sbr.rel (%p166_p3) target bundleno = 621 (0x26d), region = 28  ;;  %4086 = vmatprep.subr.bf16.mxu0 (!%p166_p3), %v4645_v0  ;;  %3960 = vmatprep.subr.bf16.mxu1 (!%p166_p3), %v4645_v0  ;;  %p203_p4 = scmp.lt.s32.totalorder (!%p166_p3), %s4635_s12, 1  ;;  %v860_v3 = vsel (!%p166_p3), %vm553_vm0, %v4554_v1, 0  ;;  %vm4646_vm1 = vmmov (!%p166_p3), 0   ;;  %v555_v4 = vsel (!%p166_p3), %vm553_vm0, %v4555_v2, 0  ;;  %vm459_vm2 = vcmask (!%p166_p3), 97280  }
   0x8   : > { %3962 = vmatprep.mubr.msk.bf16.mxu1 (!%p166_p3), %vm4646_vm1, %v4645_v0  ;;  %4088 = vmatprep.mubr.msk.bf16.mxu0 (!%p166_p3), %vm4646_vm1, %v4645_v0  ;;  %v4558_v5 = vld [vmem:[%s5259_s1 + $0x10] sm:$0x3f] (!%p166_p3)  }
   0x9   : > { %4087 = vmatpush3.bf16.msra.mxu0 (!%p166_p3), %v860_v3  ;;  %3961 = vmatpush3.bf16.msra.mxu1 (!%p166_p3), %v555_v4  ;;  %v1462_v8 = vsel (!%p166_p3), %vm553_vm0, %v4558_v5, 0 }
   0xa   : > { %4212 = vmatprep.subr.bf16.mxu0 (!%p166_p3), %v4645_v0  ;;  %4338 = vmatprep.subr.bf16.mxu1 (!%p166_p3), %v4645_v0 }
   0xe   : > { %s5267_s12 = smov (!%p203_p4, %s4635_s12), 1 }
   0xf   : > { %s4526_s20 = smul.u32 288, %s5267_s12  ;;  %s3388_s30 = sshll.u32 %s5267_s12, 1 }
  0x10   : > { %s4527_s26 = smul.u32 248, %s5267_s12  ;;  %s226_s6 = scalar_lea.vmem %s5261_s3, %s3388_s30 }
  0x11   : > { %s4710_s25 = scalar_lea.vmem %s5258_s0, %s4526_s20 }
  0x12   : > { %v4556_v6 = vld [vmem:[%s4710_s25 + $0x10] sm:$0xff]   ;;  %v4557_v7 = vld [vmem:[%s4710_s25] sm:$0xff]   ;;  %v4559_v9 = vld [vmem:[%s4710_s25 + $0x18] sm:$0xff]   ;;  %s5159_s29 = scalar_lea.vmem %s5260_s2, %s4527_s26 }
  0x13   : > { %3963 = vmatmul.mubr.msk.bf16.vlgmr.msra.gmra.mrb[0].mxu1 %vm459_vm2, %v4556_v6  ;;  %4089 = vmatmul.mubr.msk.bf16.vlgmr.msra.gmra.mrb[0].mxu0 %vm459_vm2, %v4557_v7  ;;  %v4560_v10 = vld [vmem:[%s4710_s25 + $0x8] sm:$0xff]   ;;  %v4561_v11 = vld [vmem:[%s4710_s25 + $0x20] sm:$0xff]   ;;  %v4563_v13 = vld [vmem:[%s4710_s25 + $0x30] sm:$0xff]  }
  0x14   : > { %3966 = vmatprep.mubr.msk.bf16.mxu1 %vm4646_vm1, %v4645_v0  ;;  %4213 = vmatpush3.bf16.msra.mxu0 %v1462_v8  ;;  %v4562_v12 = vld [vmem:[%s4710_s25 + $0x28] sm:$0xff]   ;;  %v4564_v14 = vld [vmem:[%s4710_s25 + $0x38] sm:$0xff]   ;;  %v4565_v15 = vld [vmem:[%s4710_s25 + $0x40] sm:$0xff]  }
  0x15   : > { %4092 = vmatprep.mubr.msk.bf16.mxu0 %vm4646_vm1, %v4645_v0  ;;  %4339 = vmatpush3.bf16.msra.mxu1 %v860_v3  ;;  %v4566_v16 = vld [vmem:[%s4710_s25 + $0x48] sm:$0xff]   ;;  %v4567_v17 = vld [vmem:[%s4710_s25 + $0x50] sm:$0xff]   ;;  %v4568_v18 = vld [vmem:[%s4710_s25 + $0x58] sm:$0xff]  }
  0x16   : > { %v4569_v19 = vld [vmem:[%s4710_s25 + $0x60] sm:$0xff]   ;;  %v4570_v20 = vld [vmem:[%s4710_s25 + $0x68] sm:$0xff]   ;;  %v4571_v21 = vld [vmem:[%s4710_s25 + $0x70] sm:$0xff]  }
  0x17   : > { %v4572_v22 = vld [vmem:[%s4710_s25 + $0x78] sm:$0xff]   ;;  %v4814_v23 = vld [vmem:[%s4710_s25 + $0x80] sm:$0xff]   ;;  %v4824_v24 = vld [vmem:[%s4710_s25 + $0x88] sm:$0xff]  }
  0x18   : > { %v4834_v25 = vld [vmem:[%s4710_s25 + $0x90] sm:$0xff]   ;;  %v4576_v26 = vld [vmem:[%s4710_s25 + $0x20] sm:$0xff]   ;;  %v4845_v27 = vld [vmem:[%s4710_s25 + $0x98] sm:$0xff]  }
  0x19   : > { %v4578_v28 = vld [vmem:[%s4710_s25 + $0x28] sm:$0xff]   ;;  %v4856_v29 = vld [vmem:[%s4710_s25 + $0xa0] sm:$0xff]   ;;  %v4580_v30 = vld [vmem:[%s4710_s25 + $0x30] sm:$0xff]  }
  0x1a   : > { %v4867_v31 = vld [vmem:[%s4710_s25 + $0xa8] sm:$0xff]   ;;  %v4582_v32 = vld [vmem:[%s4710_s25 + $0x38] sm:$0xff]   ;;  %v4878_v33 = vld [vmem:[%s4710_s25 + $0xb0] sm:$0xff]  }
  0x1b   : > { %3967 = vmatmul.mubr.msk.bf16.gmra.mrb[4].mxu1 %vm459_vm2, %v4559_v9  ;;  %4093 = vmatmul.mubr.msk.bf16.gmra.mrb[4].mxu0 %vm459_vm2, %v4560_v10  ;;  %v4584_v34 = vld [vmem:[%s4710_s25 + $0x40] sm:$0xff]   ;;  %v4889_v35 = vld [vmem:[%s4710_s25 + $0xb8] sm:$0xff]   ;;  %v4586_v36 = vld [vmem:[%s4710_s25 + $0x48] sm:$0xff]  }
  0x1c   : > { %3970 = vmatprep.mubr.msk.bf16.mxu1 %vm4646_vm1, %v4645_v0  ;;  %4096 = vmatprep.mubr.msk.bf16.mxu0 %vm4646_vm1, %v4645_v0  ;;  %v4900_v37 = vld [vmem:[%s4710_s25 + $0xc0] sm:$0xff]   ;;  %v4588_v38 = vld [vmem:[%s4710_s25 + $0x50] sm:$0xff]   ;;  %v4911_v39 = vld [vmem:[%s4710_s25 + $0xc8] sm:$0xff]  }
  0x1d   : > { %v4590_v40 = vld [vmem:[%s4710_s25 + $0x58] sm:$0xff]   ;;  %v4922_v41 = vld [vmem:[%s4710_s25 + $0xd0] sm:$0xff]   ;;  %v4592_v42 = vld [vmem:[%s4710_s25 + $0x60] sm:$0xff]  }
  0x1e   : > { %v4933_v43 = vld [vmem:[%s4710_s25 + $0xd8] sm:$0xff]   ;;  %v4594_v44 = vld [vmem:[%s4710_s25 + $0x68] sm:$0xff]   ;;  %v4944_v45 = vld [vmem:[%s4710_s25 + $0xe0] sm:$0xff]  }
  0x1f   : > { %v4596_v46 = vld [vmem:[%s4710_s25 + $0x70] sm:$0xff]   ;;  %v4957_v48 = vld [vmem:[%s4710_s25 + $0xe8] sm:$0xff]   ;;  %v4598_v50 = vld [vmem:[%s4710_s25 + $0x78] sm:$0xff]  }
  0x20   : > { %v4972_v54 = vld [vmem:[%s4710_s25 + $0xf0] sm:$0xff]   ;;  %v4600_v56 = vld [vmem:[%s4710_s25 + $0x80] sm:$0xff]   ;;  %v4601_v60 = vld [vmem:[%s4710_s25 + $0xf8] sm:$0xff]  }
  0x21   : > { %v4602_v62 = vld [vmem:[%s4710_s25 + $0x88] sm:$0xff]   ;;  %v4603_v3 = vld [vmem:[%s4710_s25 + $0x100] sm:$0xff]   ;;  %v4604_v5 = vld [vmem:[%s4710_s25 + $0x90] sm:$0xff]  }
  0x22   : > { %v4605_v10 = vld [vmem:[%s4710_s25 + $0x98] sm:$0xff]  }
  0x23   : > { %3971 = vmatmul.mubr.msk.bf16.gmra.mrb[8].mxu1 %vm459_vm2, %v4561_v11  ;;  %4097 = vmatmul.mubr.msk.bf16.gmra.mrb[8].mxu0 %vm459_vm2, %v4556_v6 }
  0x24   : > { %3974 = vmatprep.mubr.msk.bf16.mxu1 %vm4646_vm1, %v4645_v0  ;;  %4100 = vmatprep.mubr.msk.bf16.mxu0 %vm4646_vm1, %v4645_v0 }
  0x2b   : > { %3975 = vmatmul.mubr.msk.bf16.gmra.mrb[12].mxu1 %vm459_vm2, %v4562_v12  ;;  %4101 = vmatmul.mubr.msk.bf16.gmra.mrb[12].mxu0 %vm459_vm2, %v4559_v9 }
  0x2c   : > { %3978 = vmatprep.mubr.msk.bf16.mxu1 %vm4646_vm1, %v4645_v0  ;;  %4104 = vmatprep.mubr.msk.bf16.mxu0 %vm4646_vm1, %v4645_v0 }
  0x33   : > { %3979 = vmatmul.mubr.msk.bf16.gmra.mrb[16].mxu1 %vm459_vm2, %v4563_v13  ;;  %4105 = vmatmul.mubr.msk.bf16.gmra.mrb[16].mxu0 %vm459_vm2, %v4561_v11 }
  0x34   : > { %3982 = vmatprep.mubr.msk.bf16.mxu1 %vm4646_vm1, %v4645_v0  ;;  %4108 = vmatprep.mubr.msk.bf16.mxu0 %vm4646_vm1, %v4645_v0 }
  0x3b   : > { %3983 = vmatmul.mubr.msk.bf16.gmra.mrb[20].mxu1 %vm459_vm2, %v4564_v14  ;;  %4109 = vmatmul.mubr.msk.bf16.gmra.mrb[20].mxu0 %vm459_vm2, %v4562_v12 }
  0x3c   : > { %3986 = vmatprep.mubr.msk.bf16.mxu1 %vm4646_vm1, %v4645_v0  ;;  %4112 = vmatprep.mubr.msk.bf16.mxu0 %vm4646_vm1, %v4645_v0 }
  0x43   : > { %3987 = vmatmul.mubr.msk.bf16.gmra.mrb[24].mxu1 %vm459_vm2, %v4565_v15  ;;  %4113 = vmatmul.mubr.msk.bf16.gmra.mrb[24].mxu0 %vm459_vm2, %v4563_v13 }
  0x44   : > { %3990 = vmatprep.mubr.msk.bf16.mxu1 %vm4646_vm1, %v4645_v0  ;;  %4116 = vmatprep.mubr.msk.bf16.mxu0 %vm4646_vm1, %v4645_v0 }
  0x4b   : > { %3991 = vmatmul.mubr.msk.bf16.gmra.mrb[28].mxu1 %vm459_vm2, %v4566_v16  ;;  %4117 = vmatmul.mubr.msk.bf16.gmra.mrb[28].mxu0 %vm459_vm2, %v4564_v14 }
  0x4c   : > { %3994 = vmatprep.mubr.msk.bf16.mxu1 %vm4646_vm1, %v4645_v0  ;;  %4120 = vmatprep.mubr.msk.bf16.mxu0 %vm4646_vm1, %v4645_v0 }
  0x53   : > { %3995 = vmatmul.mubr.msk.bf16.gmra.mrb[32].mxu1 %vm459_vm2, %v4567_v17  ;;  %4121 = vmatmul.mubr.msk.bf16.gmra.mrb[32].mxu0 %vm459_vm2, %v4565_v15  ;;  %v4606_v15 = vld [vmem:[%s4710_s25 + $0xa0] sm:$0xff]  }
  0x54   : > { %3998 = vmatprep.mubr.msk.bf16.mxu1 %vm4646_vm1, %v4645_v0  ;;  %4124 = vmatprep.mubr.msk.bf16.mxu0 %vm4646_vm1, %v4645_v0 }
  0x5b   : > { %3999 = vmatmul.mubr.msk.bf16.gmra.mrb[36].mxu1 %vm459_vm2, %v4568_v18  ;;  %4125 = vmatmul.mubr.msk.bf16.gmra.mrb[36].mxu0 %vm459_vm2, %v4566_v16 }
  0x5c   : > { %4002 = vmatprep.mubr.msk.bf16.mxu1 %vm4646_vm1, %v4645_v0  ;;  %4128 = vmatprep.mubr.msk.bf16.mxu0 %vm4646_vm1, %v4645_v0 }
  0x63   : > { %4003 = vmatmul.mubr.msk.bf16.gmra.mrb[40].mxu1 %vm459_vm2, %v4569_v19  ;;  %4129 = vmatmul.mubr.msk.bf16.gmra.mrb[40].mxu0 %vm459_vm2, %v4567_v17 }
  0x64   : > { %4006 = vmatprep.mubr.msk.bf16.mxu1 %vm4646_vm1, %v4645_v0  ;;  %4132 = vmatprep.mubr.msk.bf16.mxu0 %vm4646_vm1, %v4645_v0 }
  0x6b   : > { %4007 = vmatmul.mubr.msk.bf16.gmra.mrb[44].mxu1 %vm459_vm2, %v4570_v20  ;;  %4133 = vmatmul.mubr.msk.bf16.gmra.mrb[44].mxu0 %vm459_vm2, %v4568_v18 }
  0x6c   : > { %4010 = vmatprep.mubr.msk.bf16.mxu1 %vm4646_vm1, %v4645_v0  ;;  %4136 = vmatprep.mubr.msk.bf16.mxu0 %vm4646_vm1, %v4645_v0 }
  0x73   : > { %4011 = vmatmul.mubr.msk.bf16.gmra.mrb[48].mxu1 %vm459_vm2, %v4571_v21  ;;  %4137 = vmatmul.mubr.msk.bf16.gmra.mrb[48].mxu0 %vm459_vm2, %v4569_v19 }
  0x74   : > { %4014 = vmatprep.mubr.msk.bf16.mxu1 %vm4646_vm1, %v4645_v0  ;;  %4140 = vmatprep.mubr.msk.bf16.mxu0 %vm4646_vm1, %v4645_v0 }
  0x7b   : > { %4015 = vmatmul.mubr.msk.bf16.gmra.mrb[52].mxu1 %vm459_vm2, %v4572_v22  ;;  %4141 = vmatmul.mubr.msk.bf16.gmra.mrb[52].mxu0 %vm459_vm2, %v4570_v20  ;;  %v4607_v20 = vld [vmem:[%s4710_s25 + $0xa8] sm:$0xff]  }
  0x7c   : > { %4018 = vmatprep.mubr.msk.bf16.mxu1 %vm4646_vm1, %v4645_v0  ;;  %4144 = vmatprep.mubr.msk.bf16.mxu0 %vm4646_vm1, %v4645_v0 }
  0x83   : > { %4019 = vmatmul.mubr.msk.bf16.gmra.mrb[56].mxu1 %vm459_vm2, %v4814_v23  ;;  %4145 = vmatmul.mubr.msk.bf16.gmra.mrb[56].mxu0 %vm459_vm2, %v4571_v21 }
  0x84   : > { %4022 = vmatprep.mubr.msk.bf16.mxu1 %vm4646_vm1, %v4645_v0  ;;  %4148 = vmatprep.mubr.msk.bf16.mxu0 %vm4646_vm1, %v4645_v0 }
  0x8b   : > { %4023 = vmatmul.mubr.msk.bf16.gmra.mrb[60].mxu1 %vm459_vm2, %v4824_v24  ;;  %4149 = vmatmul.mubr.msk.bf16.gmra.mrb[60].mxu0 %vm459_vm2, %v4572_v22 }
  0x8c   : > { %4026 = vmatprep.mubr.msk.bf16.mxu1 %vm4646_vm1, %v4645_v0  ;;  %4214 = vmatprep.mubr.msk.bf16.mxu0 %vm4646_vm1, %v4645_v0 }
  0x93   : > { %4027 = vmatmul.mubr.msk.bf16.gmra.mrb[64].mxu1 %vm459_vm2, %v4834_v25  ;;  %4215 = vmatmul.mubr.msk.bf16.vlgmr.msra.gmra.mrb[0].mxu0 %vm459_vm2, %v4576_v26  ;;  %v4608_v26 = vld [vmem:[%s4710_s25 + $0xb0] sm:$0xff]  }
  0x94   : > { %4030 = vmatprep.mubr.msk.bf16.mxu1 %vm4646_vm1, %v4645_v0  ;;  %4218 = vmatprep.mubr.msk.bf16.mxu0 %vm4646_vm1, %v4645_v0 }
  0x9b   : > { %4031 = vmatmul.mubr.msk.bf16.gmra.mrb[68].mxu1 %vm459_vm2, %v4845_v27  ;;  %4219 = vmatmul.mubr.msk.bf16.gmra.mrb[4].mxu0 %vm459_vm2, %v4578_v28 }
  0x9c   : > { %4034 = vmatprep.mubr.msk.bf16.mxu1 %vm4646_vm1, %v4645_v0  ;;  %4222 = vmatprep.mubr.msk.bf16.mxu0 %vm4646_vm1, %v4645_v0 }
  0xa3   : > { %4035 = vmatmul.mubr.msk.bf16.gmra.mrb[72].mxu1 %vm459_vm2, %v4856_v29  ;;  %4223 = vmatmul.mubr.msk.bf16.gmra.mrb[8].mxu0 %vm459_vm2, %v4580_v30 }
  0xa4   : > { %4038 = vmatprep.mubr.msk.bf16.mxu1 %vm4646_vm1, %v4645_v0  ;;  %4226 = vmatprep.mubr.msk.bf16.mxu0 %vm4646_vm1, %v4645_v0 }
  0xab   : > { %4039 = vmatmul.mubr.msk.bf16.gmra.mrb[76].mxu1 %vm459_vm2, %v4867_v31  ;;  %4227 = vmatmul.mubr.msk.bf16.gmra.mrb[12].mxu0 %vm459_vm2, %v4582_v32 }
  0xac   : > { %4042 = vmatprep.mubr.msk.bf16.mxu1 %vm4646_vm1, %v4645_v0  ;;  %4230 = vmatprep.mubr.msk.bf16.mxu0 %vm4646_vm1, %v4645_v0 }
  0xb3   : > { %4043 = vmatmul.mubr.msk.bf16.gmra.mrb[80].mxu1 %vm459_vm2, %v4878_v33  ;;  %4231 = vmatmul.mubr.msk.bf16.gmra.mrb[16].mxu0 %vm459_vm2, %v4584_v34  ;;  %v4609_v34 = vld [vmem:[%s4710_s25 + $0xb8] sm:$0xff]  }
  0xb4   : > { %4046 = vmatprep.mubr.msk.bf16.mxu1 %vm4646_vm1, %v4645_v0  ;;  %4234 = vmatprep.mubr.msk.bf16.mxu0 %vm4646_vm1, %v4645_v0 }
  0xbb   : > { %4047 = vmatmul.mubr.msk.bf16.gmra.mrb[84].mxu1 %vm459_vm2, %v4889_v35  ;;  %4235 = vmatmul.mubr.msk.bf16.gmra.mrb[20].mxu0 %vm459_vm2, %v4586_v36 }
  0xbc   : > { %4050 = vmatprep.mubr.msk.bf16.mxu1 %vm4646_vm1, %v4645_v0  ;;  %4238 = vmatprep.mubr.msk.bf16.mxu0 %vm4646_vm1, %v4645_v0 }
  0xc3   : > { %4051 = vmatmul.mubr.msk.bf16.gmra.mrb[88].mxu1 %vm459_vm2, %v4900_v37  ;;  %4239 = vmatmul.mubr.msk.bf16.gmra.mrb[24].mxu0 %vm459_vm2, %v4588_v38 }
  0xc4   : > { %4054 = vmatprep.mubr.msk.bf16.mxu1 %vm4646_vm1, %v4645_v0  ;;  %4242 = vmatprep.mubr.msk.bf16.mxu0 %vm4646_vm1, %v4645_v0 }
  0xcb   : > { %4055 = vmatmul.mubr.msk.bf16.gmra.mrb[92].mxu1 %vm459_vm2, %v4911_v39  ;;  %4243 = vmatmul.mubr.msk.bf16.gmra.mrb[28].mxu0 %vm459_vm2, %v4590_v40 }
  0xcc   : > { %4058 = vmatprep.mubr.msk.bf16.mxu1 %vm4646_vm1, %v4645_v0  ;;  %4246 = vmatprep.mubr.msk.bf16.mxu0 %vm4646_vm1, %v4645_v0 }
  0xd3   : > { %4059 = vmatmul.mubr.msk.bf16.gmra.mrb[96].mxu1 %vm459_vm2, %v4922_v41  ;;  %4247 = vmatmul.mubr.msk.bf16.gmra.mrb[32].mxu0 %vm459_vm2, %v4592_v42  ;;  %v4610_v42 = vld [vmem:[%s4710_s25 + $0xc0] sm:$0xff]  }
  0xd4   : > { %4062 = vmatprep.mubr.msk.bf16.mxu1 %vm4646_vm1, %v4645_v0  ;;  %4250 = vmatprep.mubr.msk.bf16.mxu0 %vm4646_vm1, %v4645_v0 }
  0xdb   : > { %4063 = vmatmul.mubr.msk.bf16.gmra.mrb[100].mxu1 %vm459_vm2, %v4933_v43  ;;  %4251 = vmatmul.mubr.msk.bf16.gmra.mrb[36].mxu0 %vm459_vm2, %v4594_v44 }
  0xdc   : > { %4066 = vmatprep.mubr.msk.bf16.mxu1 %vm4646_vm1, %v4645_v0  ;;  %4254 = vmatprep.mubr.msk.bf16.mxu0 %vm4646_vm1, %v4645_v0 }
  0xe3   : > { %4067 = vmatmul.mubr.msk.bf16.gmra.mrb[104].mxu1 %vm459_vm2, %v4944_v45  ;;  %4255 = vmatmul.mubr.msk.bf16.gmra.mrb[40].mxu0 %vm459_vm2, %v4596_v46 }
  0xe4   : > { %4070 = vmatprep.mubr.msk.bf16.mxu1 %vm4646_vm1, %v4645_v0  ;;  %4258 = vmatprep.mubr.msk.bf16.mxu0 %vm4646_vm1, %v4645_v0 }
  0xe6   : > { %v4954_v47 = vpop.f32.mrb[0].mxu1 }
  0xe7   : > { %v3964_v49 = vpop.f32.mrb[1].mxu1 }
  0xe8   : > { %v4960_v51 = vpop.f32.mrb[2].mxu1 }
  0xe9   : > { %v3965_v52 = vpop.f32.mrb[3].mxu1 }
  0xeb   : > { %4071 = vmatmul.mubr.msk.bf16.gmra.mrb[108].mxu1 %vm459_vm2, %v4957_v48  ;;  %4259 = vmatmul.mubr.msk.bf16.gmra.mrb[44].mxu0 %vm459_vm2, %v4598_v50  ;;  %v4611_v50 = vld [vmem:[%s4710_s25 + $0xc8] sm:$0xff]  }
  0xec   : > { %4074 = vmatprep.mubr.msk.bf16.mxu1 %vm4646_vm1, %v4645_v0  ;;  %4262 = vmatprep.mubr.msk.bf16.mxu0 %vm4646_vm1, %v4645_v0 }
  0xee   : > { %v4969_v53 = vpop.f32.mrb[4].mxu1 }
  0xef   : > { %v3968_v55 = vpop.f32.mrb[5].mxu1 }
  0xf0   : > { %v4975_v57 = vpop.f32.mrb[6].mxu1 }
  0xf1   : > { %v3969_v58 = vpop.f32.mrb[7].mxu1 }
  0xf2   : > { %v4612_v58 = vld [vmem:[%s4710_s25 + $0xd0] sm:$0xff]  }
  0xf3   : > { %4075 = vmatmul.mubr.msk.bf16.gmra.mrb[112].mxu1 %vm459_vm2, %v4972_v54  ;;  %4263 = vmatmul.mubr.msk.bf16.gmra.mrb[48].mxu0 %vm459_vm2, %v4600_v56 }
  0xf4   : > { %4078 = vmatprep.mubr.msk.bf16.mxu1 %vm4646_vm1, %v4645_v0  ;;  %4266 = vmatprep.mubr.msk.bf16.mxu0 %vm4646_vm1, %v4645_v0 }
  0xf6   : > { %v4984_v59 = vpop.f32.mrb[8].mxu1 }
  0xf7   : > { %v3972_v61 = vpop.f32.mrb[9].mxu1 }
  0xf8   : > { %v4988_v63 = vpop.f32.mrb[10].mxu1 }
  0xf9   : > { %v3973_v1 = vpop.f32.mrb[11].mxu1 }
  0xfa   : > { %v4613_v1 = vld [vmem:[%s4710_s25 + $0xd8] sm:$0xff]  }
  0xfb   : > { %4079 = vmatmul.mubr.msk.bf16.gmra.mrb[116].mxu1 %vm459_vm2, %v4601_v60  ;;  %4267 = vmatmul.mubr.msk.bf16.gmra.mrb[52].mxu0 %vm459_vm2, %v4602_v62 }
  0xfc   : > { %4082 = vmatprep.mubr.msk.bf16.mxu1 %vm4646_vm1, %v4645_v0  ;;  %4270 = vmatprep.mubr.msk.bf16.mxu0 %vm4646_vm1, %v4645_v0 }
  0xfe   : > { %v4996_v2 = vpop.f32.mrb[12].mxu1 }
  0xff   : > { %v3976_v4 = vpop.f32.mrb[13].mxu1 }
 0x100   : > { %v5000_v6 = vpop.f32.mrb[14].mxu1 }
 0x101   : > { %v3977_v7 = vpop.f32.mrb[15].mxu1 }
 0x102   : > { %v4614_v7 = vld [vmem:[%s4710_s25 + $0xe0] sm:$0xff]  }
 0x103   : > { %4083 = vmatmul.mubr.msk.bf16.gmra.mrb[120].mxu1 %vm459_vm2, %v4603_v3  ;;  %4271 = vmatmul.mubr.msk.bf16.gmra.mrb[56].mxu0 %vm459_vm2, %v4604_v5 }
 0x104   : > { %4152 = vmatprep.mubr.msk.bf16.mxu1 %vm4646_vm1, %v4645_v0  ;;  %4274 = vmatprep.mubr.msk.bf16.mxu0 %vm4646_vm1, %v4645_v0 }
 0x106   : > { %v5008_v8 = vpop.f32.mrb[16].mxu1 }
 0x107   : > { %v3980_v9 = vpop.f32.mrb[17].mxu1 }
 0x108   : > { %v5011_v11 = vpop.f32.mrb[18].mxu1 }
 0x109   : > { %v3981_v12 = vpop.f32.mrb[19].mxu1 }
 0x10b   : > { %4153 = vmatmul.mubr.msk.bf16.vlgmr.msra.gmra.mrb[64].mxu1 %vm459_vm2, %v4814_v23  ;;  %4275 = vmatmul.mubr.msk.bf16.gmra.mrb[60].mxu0 %vm459_vm2, %v4605_v10 }
 0x10c   : > { %4156 = vmatprep.mubr.msk.bf16.mxu1 %vm4646_vm1, %v4645_v0  ;;  %4278 = vmatprep.mubr.msk.bf16.mxu0 %vm4646_vm1, %v4645_v0 }
 0x10e   : > { %v5020_v13 = vpop.f32.mrb[20].mxu1 }
 0x10f   : > { %v3984_v14 = vpop.f32.mrb[21].mxu1 }
 0x110   : > { %v5023_v16 = vpop.f32.mrb[22].mxu1  ;;  %v4615_v14 = vld [vmem:[%s4710_s25 + $0xe8] sm:$0xff]  }
 0x111   : > { %v3985_v17 = vpop.f32.mrb[23].mxu1 }
 0x113   : > { %4157 = vmatmul.mubr.msk.bf16.gmra.mrb[68].mxu1 %vm459_vm2, %v4824_v24  ;;  %4279 = vmatmul.mubr.msk.bf16.gmra.mrb[64].mxu0 %vm459_vm2, %v4606_v15 }
 0x114   : > { %4160 = vmatprep.mubr.msk.bf16.mxu1 %vm4646_vm1, %v4645_v0  ;;  %4282 = vmatprep.mubr.msk.bf16.mxu0 %vm4646_vm1, %v4645_v0 }
 0x116   : > { %v5032_v18 = vpop.f32.mrb[24].mxu1 }
 0x117   : > { %v3988_v19 = vpop.f32.mrb[25].mxu1 }
 0x118   : > { %v5035_v21 = vpop.f32.mrb[26].mxu1 }
 0x119   : > { %v3989_v22 = vpop.f32.mrb[27].mxu1 }
 0x11b   : > { %4161 = vmatmul.mubr.msk.bf16.gmra.mrb[72].mxu1 %vm459_vm2, %v4834_v25  ;;  %4283 = vmatmul.mubr.msk.bf16.gmra.mrb[68].mxu0 %vm459_vm2, %v4607_v20  ;;  %v4616_v20 = vld [vmem:[%s4710_s25 + $0xf0] sm:$0xff]  }
 0x11c   : > { %4164 = vmatprep.mubr.msk.bf16.mxu1 %vm4646_vm1, %v4645_v0  ;;  %4286 = vmatprep.mubr.msk.bf16.mxu0 %vm4646_vm1, %v4645_v0 }
 0x11e   : > { %v5044_v23 = vpop.f32.mrb[28].mxu1 }
 0x11f   : > { %v3992_v24 = vpop.f32.mrb[29].mxu1 }
 0x120   : > { %v5047_v28 = vpop.f32.mrb[30].mxu1 }
 0x121   : > { %v3993_v30 = vpop.f32.mrb[31].mxu1 }
 0x123   : > { %4165 = vmatmul.mubr.msk.bf16.gmra.mrb[76].mxu1 %vm459_vm2, %v4845_v27  ;;  %4287 = vmatmul.mubr.msk.bf16.gmra.mrb[72].mxu0 %vm459_vm2, %v4608_v26 }
 0x124   : > { %4168 = vmatprep.mubr.msk.bf16.mxu1 %vm4646_vm1, %v4645_v0  ;;  %4290 = vmatprep.mubr.msk.bf16.mxu0 %vm4646_vm1, %v4645_v0 }
 0x126   : > { %v5056_v25 = vpop.f32.mrb[32].mxu1 }
 0x127   : > { %v3996_v32 = vpop.f32.mrb[33].mxu1 }
 0x128   : > { %v5059_v36 = vpop.f32.mrb[34].mxu1  ;;  %v4617_v32 = vld [vmem:[%s4710_s25 + $0xf8] sm:$0xff]  }
 0x129   : > { %v3997_v38 = vpop.f32.mrb[35].mxu1 }
 0x12b   : > { %4169 = vmatmul.mubr.msk.bf16.gmra.mrb[80].mxu1 %vm459_vm2, %v4856_v29  ;;  %4291 = vmatmul.mubr.msk.bf16.gmra.mrb[76].mxu0 %vm459_vm2, %v4609_v34 }
 0x12c   : > { %4172 = vmatprep.mubr.msk.bf16.mxu1 %vm4646_vm1, %v4645_v0  ;;  %4294 = vmatprep.mubr.msk.bf16.mxu0 %vm4646_vm1, %v4645_v0 }
 0x12e   : > { %v5068_v27 = vpop.f32.mrb[36].mxu1 }
 0x12f   : > { %v4000_v40 = vpop.f32.mrb[37].mxu1 }
 0x130   : > { %v5071_v44 = vpop.f32.mrb[38].mxu1 }
 0x131   : > { %v4001_v46 = vpop.f32.mrb[39].mxu1 }
 0x133   : > { %4173 = vmatmul.mubr.msk.bf16.gmra.mrb[84].mxu1 %vm459_vm2, %v4867_v31  ;;  %4295 = vmatmul.mubr.msk.bf16.gmra.mrb[80].mxu0 %vm459_vm2, %v4610_v42 }
 0x134   : > { %4176 = vmatprep.mubr.msk.bf16.mxu1 %vm4646_vm1, %v4645_v0  ;;  %4298 = vmatprep.mubr.msk.bf16.mxu0 %vm4646_vm1, %v4645_v0 }
 0x136   : > { %v5080_v29 = vpop.f32.mrb[40].mxu1 }
 0x137   : > { %v4004_v49 = vpop.f32.mrb[41].mxu1 }
 0x138   : > { %v5083_v52 = vpop.f32.mrb[42].mxu1 }
 0x139   : > { %v4005_v55 = vpop.f32.mrb[43].mxu1 }
 0x13b   : > { %4177 = vmatmul.mubr.msk.bf16.gmra.mrb[88].mxu1 %vm459_vm2, %v4878_v33  ;;  %4299 = vmatmul.mubr.msk.bf16.gmra.mrb[84].mxu0 %vm459_vm2, %v4611_v50 }
 0x13c   : > { %4180 = vmatprep.mubr.msk.bf16.mxu1 %vm4646_vm1, %v4645_v0  ;;  %4302 = vmatprep.mubr.msk.bf16.mxu0 %vm4646_vm1, %v4645_v0 }
 0x13e   : > { %v5092_v31 = vpop.f32.mrb[44].mxu1 }
 0x13f   : > { %v4008_v56 = vpop.f32.mrb[45].mxu1 }
 0x140   : > { %v5095_v60 = vpop.f32.mrb[46].mxu1 }
 0x141   : > { %v4009_v61 = vpop.f32.mrb[47].mxu1 }
 0x143   : > { %4181 = vmatmul.mubr.msk.bf16.gmra.mrb[92].mxu1 %vm459_vm2, %v4889_v35  ;;  %4303 = vmatmul.mubr.msk.bf16.gmra.mrb[88].mxu0 %vm459_vm2, %v4612_v58 }
 0x144   : > { %4184 = vmatprep.mubr.msk.bf16.mxu1 %vm4646_vm1, %v4645_v0  ;;  %4306 = vmatprep.mubr.msk.bf16.mxu0 %vm4646_vm1, %v4645_v0 }
 0x146   : > { %v5104_v33 = vpop.f32.mrb[48].mxu1 }
 0x147   : > { %v4012_v62 = vpop.f32.mrb[49].mxu1 }
 0x148   : > { %v5107_v3 = vpop.f32.mrb[50].mxu1 }
 0x149   : > { %v4013_v4 = vpop.f32.mrb[51].mxu1 }
 0x14b   : > { %4185 = vmatmul.mubr.msk.bf16.gmra.mrb[96].mxu1 %vm459_vm2, %v4900_v37  ;;  %4307 = vmatmul.mubr.msk.bf16.gmra.mrb[92].mxu0 %vm459_vm2, %v4613_v1 }
 0x14c   : > { %4188 = vmatprep.mubr.msk.bf16.mxu1 %vm4646_vm1, %v4645_v0  ;;  %4310 = vmatprep.mubr.msk.bf16.mxu0 %vm4646_vm1, %v4645_v0 }
 0x14e   : > { %v5116_v35 = vpop.f32.mrb[52].mxu1 }
 0x14f   : > { %v4016_v5 = vpop.f32.mrb[53].mxu1 }
 0x150   : > { %v5119_v9 = vpop.f32.mrb[54].mxu1 }
 0x151   : > { %v4017_v10 = vpop.f32.mrb[55].mxu1 }
 0x153   : > { %4189 = vmatmul.mubr.msk.bf16.gmra.mrb[100].mxu1 %vm459_vm2, %v4911_v39  ;;  %4311 = vmatmul.mubr.msk.bf16.gmra.mrb[96].mxu0 %vm459_vm2, %v4614_v7 }
 0x154   : > { %4192 = vmatprep.mubr.msk.bf16.mxu1 %vm4646_vm1, %v4645_v0  ;;  %4314 = vmatprep.mubr.msk.bf16.mxu0 %vm4646_vm1, %v4645_v0 }
 0x156   : > { %v5128_v37 = vpop.f32.mrb[56].mxu1 }
 0x157   : > { %v4020_v12 = vpop.f32.mrb[57].mxu1 }
 0x158   : > { %v5131_v15 = vpop.f32.mrb[58].mxu1 }
 0x159   : > { %v4021_v17 = vpop.f32.mrb[59].mxu1 }
 0x15b   : > { %4193 = vmatmul.mubr.msk.bf16.gmra.mrb[104].mxu1 %vm459_vm2, %v4922_v41  ;;  %4315 = vmatmul.mubr.msk.bf16.gmra.mrb[100].mxu0 %vm459_vm2, %v4615_v14 }
 0x15c   : > { %4196 = vmatprep.mubr.msk.bf16.mxu1 %vm4646_vm1, %v4645_v0  ;;  %4318 = vmatprep.mubr.msk.bf16.mxu0 %vm4646_vm1, %v4645_v0 }
 0x15e   : > { %v5140_v39 = vpop.f32.mrb[60].mxu1 }
 0x15f   : > { %v4024_v19 = vpop.f32.mrb[61].mxu1 }
 0x160   : > { %v5143_v22 = vpop.f32.mrb[62].mxu1 }
 0x161   : > { %v4025_v24 = vpop.f32.mrb[63].mxu1 }
 0x163   : > { %4197 = vmatmul.mubr.msk.bf16.gmra.mrb[108].mxu1 %vm459_vm2, %v4933_v43  ;;  %4319 = vmatmul.mubr.msk.bf16.gmra.mrb[104].mxu0 %vm459_vm2, %v4616_v20 }
 0x164   : > { %4200 = vmatprep.mubr.msk.bf16.mxu1 %vm4646_vm1, %v4645_v0  ;;  %4322 = vmatprep.mubr.msk.bf16.mxu0 %vm4646_vm1, %v4645_v0 }
 0x166   : > { %v1498_v41 = vpop.f32.mrb[0].mxu0 }
 0x167   : > { %v4340_v26 = vadd.f32 %v1498_v41, %v4954_v47  ;;  %v4216_v30 = vpop.f32.mrb[1].mxu0 }
 0x168   : > { %v1501_v34 = vpop.f32.mrb[2].mxu0 }
 0x169   : > { %v4341_v38 = vadd.f32 %v1501_v34, %v4960_v51  ;;  %v4217_v40 = vpop.f32.mrb[3].mxu0  ;;  %v3116_v43 = vmul.f32 %v4340_v26, %v4340_v26 }
 0x16b   : > { %4201 = vmatmul.mubr.msk.bf16.gmra.mrb[112].mxu1 %vm459_vm2, %v4944_v45  ;;  %v3682_v42 = vpack.c.bf16 %v4341_v38, %v4340_v26  ;;  %v3048_v46 = vadd.f32 %v4341_v38, %v4340_v26  ;;  %v3117_v47 = vmul.f32 %v4341_v38, %v4341_v38  ;;  %4323 = vmatmul.mubr.msk.bf16.gmra.mrb[108].mxu0 %vm459_vm2, %v4617_v32  ;;  %v4618_v45 = vld [vmem:[%s4710_s25 + $0x100] sm:$0xff]   ;;  %v4620_v26 = vld [vmem:[%s4710_s25 + $0x110] sm:$0xff]  }
 0x16c   : > { %4204 = vmatprep.mubr.msk.bf16.mxu1 %vm4646_vm1, %v4645_v0  ;;  %4326 = vmatprep.mubr.msk.bf16.mxu0 %vm4646_vm1, %v4645_v0 }
 0x16d   : > { %3683 = vst [vmem:[%s5159_s29] sm:$0xff] %v3682_v42   ;;  %v3178_v51 = vadd.f32 %v3117_v47, %v3116_v43 }
 0x16e   : > { %v1506_v49 = vpop.f32.mrb[4].mxu0 }
 0x16f   : > { %v4342_v50 = vadd.f32 %v1506_v49, %v4969_v53  ;;  %v4220_v55 = vpop.f32.mrb[5].mxu0 }
 0x170   : > { %v1509_v56 = vpop.f32.mrb[6].mxu0 }
 0x171   : > { %v4343_v58 = vadd.f32 %v1509_v56, %v4975_v57  ;;  %v4221_v61 = vpop.f32.mrb[7].mxu0  ;;  %v4619_v57 = vld [vmem:[%s4710_s25 + $0x108] sm:$0xff]  }
 0x173   : > { %4205 = vmatmul.mubr.msk.bf16.gmra.mrb[116].mxu1 %vm459_vm2, %v4957_v48  ;;  %v3687_v62 = vpack.c.bf16 %v4343_v58, %v4342_v50  ;;  %4327 = vmatmul.mubr.msk.bf16.gmra.mrb[112].mxu0 %vm459_vm2, %v4618_v45 }
 0x174   : > { %4208 = vmatprep.mubr.msk.bf16.mxu1 %vm4646_vm1, %v4645_v0  ;;  %4330 = vmatprep.mubr.msk.bf16.mxu0 %vm4646_vm1, %v4645_v0 }
 0x175   : > { %3834 = vst [vmem:[%s5159_s29 + $0x8] sm:$0xff] %v3687_v62  }
 0x176   : > { %v1514_v53 = vpop.f32.mrb[8].mxu0 }
 0x177   : > { %v4344_v1 = vadd.f32 %v1514_v53, %v4984_v59  ;;  %v4224_v4 = vpop.f32.mrb[9].mxu0 }
 0x178   : > { %v1517_v5 = vpop.f32.mrb[10].mxu0 }
 0x179   : > { %v3051_v7 = vadd.f32 %v4344_v1, %v3048_v46  ;;  %v3120_v48 = vmul.f32 %v4344_v1, %v4344_v1  ;;  %v4345_v10 = vadd.f32 %v1517_v5, %v4988_v63  ;;  %v4225_v12 = vpop.f32.mrb[11].mxu0 }
 0x17b   : > { %4209 = vmatmul.mubr.msk.bf16.gmra.mrb[120].mxu1 %vm459_vm2, %v4972_v54  ;;  %v3181_v14 = vadd.f32 %v3178_v51, %v3120_v48  ;;  %v3692_v17 = vpack.c.bf16 %v4345_v10, %v4344_v1  ;;  %v3052_v19 = vadd.f32 %v4345_v10, %v3051_v7  ;;  %v3121_v20 = vmul.f32 %v4345_v10, %v4345_v10 }
 0x17c   : > { %4331 = vmatmul.mubr.msk.bf16.gmra.mrb[116].mxu0 %vm459_vm2, %v4619_v57 }
 0x17d   : > { %4334 = vmatprep.mubr.msk.bf16.mxu0 %vm4646_vm1, %v4645_v0  ;;  %3835 = vst [vmem:[%s5159_s29 + $0x10] sm:$0xff] %v3692_v17   ;;  %v3182_v59 = vadd.f32 %v3181_v14, %v3121_v20 }
 0x17e   : > { %v1522_v24 = vpop.f32.mrb[12].mxu0 }
 0x17f   : > { %v4346_v41 = vadd.f32 %v1522_v24, %v4996_v2  ;;  %v4228_v63 = vpop.f32.mrb[13].mxu0 }
 0x180   : > { %v1525_v30 = vpop.f32.mrb[14].mxu0 }
 0x181   : > { %v4347_v54 = vadd.f32 %v1525_v30, %v5000_v6  ;;  %v4229_v32 = vpop.f32.mrb[15].mxu0 }
 0x183   : > { %v3697_v34 = vpack.c.bf16 %v4347_v54, %v4346_v41 }
 0x184   : > { %4335 = vmatmul.mubr.msk.bf16.gmra.mrb[120].mxu0 %vm459_vm2, %v4620_v26 }
 0x185   : > { %3836 = vst [vmem:[%s5159_s29 + $0x18] sm:$0xff] %v3697_v34  }
 0x186   : > { %v1530_v38 = vpop.f32.mrb[16].mxu0 }
 0x187   : > { %v4348_v40 = vadd.f32 %v1530_v38, %v5008_v8  ;;  %v4232_v0 = vpop.f32.mrb[17].mxu0 }
 0x188   : > { %v1533_v43 = vpop.f32.mrb[18].mxu0 }
 0x189   : > { %v3055_v42 = vadd.f32 %v4348_v40, %v3052_v19  ;;  %v3124_v46 = vmul.f32 %v4348_v40, %v4348_v40  ;;  %v4349_v2 = vadd.f32 %v1533_v43, %v5011_v11  ;;  %v4233_v47 = vpop.f32.mrb[19].mxu0 }
 0x18b   : > { %v3185_v51 = vadd.f32 %v3182_v59, %v3124_v46  ;;  %v3702_v49 = vpack.c.bf16 %v4349_v2, %v4348_v40  ;;  %v3056_v6 = vadd.f32 %v4349_v2, %v3055_v42  ;;  %v3125_v50 = vmul.f32 %v4349_v2, %v4349_v2 }
 0x18d   : > { %3837 = vst [vmem:[%s5159_s29 + $0x20] sm:$0xff] %v3702_v49   ;;  %v3186_v55 = vadd.f32 %v3185_v51, %v3125_v50 }
 0x18e   : > { %v1538_v45 = vpop.f32.mrb[20].mxu0 }
 0x18f   : > { %v4350_v56 = vadd.f32 %v1538_v45, %v5020_v13  ;;  %v4236_v58 = vpop.f32.mrb[21].mxu0 }
 0x190   : > { %v1541_v61 = vpop.f32.mrb[22].mxu0 }
 0x191   : > { %v4351_v8 = vadd.f32 %v1541_v61, %v5023_v16  ;;  %v4237_v62 = vpop.f32.mrb[23].mxu0 }
 0x193   : > { %v3707_v53 = vpack.c.bf16 %v4351_v8, %v4350_v56 }
 0x195   : > { %3838 = vst [vmem:[%s5159_s29 + $0x28] sm:$0xff] %v3707_v53  }
 0x196   : > { %v1546_v1 = vpop.f32.mrb[24].mxu0 }
 0x197   : > { %v4352_v11 = vadd.f32 %v1546_v1, %v5032_v18  ;;  %v4240_v4 = vpop.f32.mrb[25].mxu0 }
 0x198   : > { %v1549_v57 = vpop.f32.mrb[26].mxu0 }
 0x199   : > { %v3059_v5 = vadd.f32 %v4352_v11, %v3056_v6  ;;  %v3128_v7 = vmul.f32 %v4352_v11, %v4352_v11  ;;  %v4353_v48 = vadd.f32 %v1549_v57, %v5035_v21  ;;  %v4241_v10 = vpop.f32.mrb[27].mxu0 }
 0x19b   : > { %v3189_v13 = vadd.f32 %v3186_v55, %v3128_v7  ;;  %v3712_v12 = vpack.c.bf16 %v4353_v48, %v4352_v11  ;;  %v3060_v14 = vadd.f32 %v4353_v48, %v3059_v5  ;;  %v3129_v17 = vmul.f32 %v4353_v48, %v4353_v48 }
 0x19d   : > { %3839 = vst [vmem:[%s5159_s29 + $0x30] sm:$0xff] %v3712_v12   ;;  %v3190_v16 = vadd.f32 %v3189_v13, %v3129_v17 }
 0x19e   : > { %v1554_v19 = vpop.f32.mrb[28].mxu0 }
 0x19f   : > { %v4354_v20 = vadd.f32 %v1554_v19, %v5044_v23  ;;  %v4244_v59 = vpop.f32.mrb[29].mxu0 }
 0x1a0   : > { %v1557_v24 = vpop.f32.mrb[30].mxu0 }
 0x1a1   : > { %v4355_v18 = vadd.f32 %v1557_v24, %v5047_v28  ;;  %v4245_v41 = vpop.f32.mrb[31].mxu0 }
 0x1a3   : > { %v3717_v63 = vpack.c.bf16 %v4355_v18, %v4354_v20 }
 0x1a5   : > { %3840 = vst [vmem:[%s5159_s29 + $0x38] sm:$0xff] %v3717_v63  }
 0x1a6   : > { %v1562_v26 = vpop.f32.mrb[32].mxu0 }
 0x1a7   : > { %v4356_v21 = vadd.f32 %v1562_v26, %v5056_v25  ;;  %v4248_v30 = vpop.f32.mrb[33].mxu0 }
 0x1a8   : > { %v1565_v54 = vpop.f32.mrb[34].mxu0 }
 0x1a9   : > { %v3063_v32 = vadd.f32 %v4356_v21, %v3060_v14  ;;  %v3132_v34 = vmul.f32 %v4356_v21, %v4356_v21  ;;  %v4357_v38 = vadd.f32 %v1565_v54, %v5059_v36  ;;  %v4249_v40 = vpop.f32.mrb[35].mxu0 }
 0x1ab   : > { %v3193_v23 = vadd.f32 %v3190_v16, %v3132_v34  ;;  %v3722_v0 = vpack.c.bf16 %v4357_v38, %v4356_v21  ;;  %v3064_v43 = vadd.f32 %v4357_v38, %v3063_v32  ;;  %v3133_v42 = vmul.f32 %v4357_v38, %v4357_v38 }
 0x1ad   : > { %3841 = vst [vmem:[%s5159_s29 + $0x40] sm:$0xff] %v3722_v0   ;;  %v3194_v28 = vadd.f32 %v3193_v23, %v3133_v42 }
 0x1ae   : > { %v1570_v46 = vpop.f32.mrb[36].mxu0 }
 0x1af   : > { %v4358_v2 = vadd.f32 %v1570_v46, %v5068_v27  ;;  %v4252_v47 = vpop.f32.mrb[37].mxu0 }
 0x1b0   : > { %v1573_v51 = vpop.f32.mrb[38].mxu0 }
 0x1b1   : > { %v4359_v25 = vadd.f32 %v1573_v51, %v5071_v44  ;;  %v4253_v49 = vpop.f32.mrb[39].mxu0 }
 0x1b3   : > { %v3727_v6 = vpack.c.bf16 %v4359_v25, %v4358_v2 }
 0x1b5   : > { %3842 = vst [vmem:[%s5159_s29 + $0x48] sm:$0xff] %v3727_v6  }
 0x1b6   : > { %v1578_v50 = vpop.f32.mrb[40].mxu0 }
 0x1b7   : > { %v4360_v36 = vadd.f32 %v1578_v50, %v5080_v29  ;;  %v4256_v55 = vpop.f32.mrb[41].mxu0 }
 0x1b8   : > { %v1581_v45 = vpop.f32.mrb[42].mxu0 }
 0x1b9   : > { %v3067_v56 = vadd.f32 %v4360_v36, %v3064_v43  ;;  %v3136_v58 = vmul.f32 %v4360_v36, %v4360_v36  ;;  %v4361_v61 = vadd.f32 %v1581_v45, %v5083_v52  ;;  %v4257_v8 = vpop.f32.mrb[43].mxu0 }
 0x1bb   : > { %v3197_v27 = vadd.f32 %v3194_v28, %v3136_v58  ;;  %v3732_v62 = vpack.c.bf16 %v4361_v61, %v4360_v36  ;;  %v3068_v53 = vadd.f32 %v4361_v61, %v3067_v56  ;;  %v3137_v1 = vmul.f32 %v4361_v61, %v4361_v61 }
 0x1bd   : > { %3843 = vst [vmem:[%s5159_s29 + $0x50] sm:$0xff] %v3732_v62   ;;  %v3198_v44 = vadd.f32 %v3197_v27, %v3137_v1 }
 0x1be   : > { %v1586_v11 = vpop.f32.mrb[44].mxu0 }
 0x1bf   : > { %v4362_v4 = vadd.f32 %v1586_v11, %v5092_v31  ;;  %v4260_v57 = vpop.f32.mrb[45].mxu0 }
 0x1c0   : > { %v1589_v5 = vpop.f32.mrb[46].mxu0 }
 0x1c1   : > { %v4363_v29 = vadd.f32 %v1589_v5, %v5095_v60  ;;  %v4261_v7 = vpop.f32.mrb[47].mxu0 }
 0x1c3   : > { %v3737_v48 = vpack.c.bf16 %v4363_v29, %v4362_v4 }
 0x1c5   : > { %3844 = vst [vmem:[%s5159_s29 + $0x58] sm:$0xff] %v3737_v48  }
 0x1c6   : > { %v1594_v10 = vpop.f32.mrb[48].mxu0 }
 0x1c7   : > { %v4364_v52 = vadd.f32 %v1594_v10, %v5104_v33  ;;  %v4264_v13 = vpop.f32.mrb[49].mxu0 }
 0x1c8   : > { %v1597_v12 = vpop.f32.mrb[50].mxu0 }
 0x1c9   : > { %v3071_v14 = vadd.f32 %v4364_v52, %v3068_v53  ;;  %v3140_v17 = vmul.f32 %v4364_v52, %v4364_v52  ;;  %v4365_v16 = vadd.f32 %v1597_v12, %v5107_v3  ;;  %v4265_v19 = vpop.f32.mrb[51].mxu0 }
 0x1cb   : > { %v3201_v31 = vadd.f32 %v3198_v44, %v3140_v17  ;;  %v3742_v20 = vpack.c.bf16 %v4365_v16, %v4364_v52  ;;  %v3072_v59 = vadd.f32 %v4365_v16, %v3071_v14  ;;  %v3141_v24 = vmul.f32 %v4365_v16, %v4365_v16 }
 0x1cd   : > { %3845 = vst [vmem:[%s5159_s29 + $0x60] sm:$0xff] %v3742_v20   ;;  %v3202_v60 = vadd.f32 %v3201_v31, %v3141_v24 }
 0x1ce   : > { %v1602_v18 = vpop.f32.mrb[52].mxu0 }
 0x1cf   : > { %v4366_v41 = vadd.f32 %v1602_v18, %v5116_v35  ;;  %v4268_v63 = vpop.f32.mrb[53].mxu0 }
 0x1d0   : > { %v1605_v26 = vpop.f32.mrb[54].mxu0 }
 0x1d1   : > { %v4367_v33 = vadd.f32 %v1605_v26, %v5119_v9  ;;  %v4269_v21 = vpop.f32.mrb[55].mxu0 }
 0x1d3   : > { %v3747_v30 = vpack.c.bf16 %v4367_v33, %v4366_v41 }
 0x1d5   : > { %3846 = vst [vmem:[%s5159_s29 + $0x68] sm:$0xff] %v3747_v30  }
 0x1d6   : > { %v1610_v54 = vpop.f32.mrb[56].mxu0 }
 0x1d7   : > { %v4368_v3 = vadd.f32 %v1610_v54, %v5128_v37  ;;  %v4272_v32 = vpop.f32.mrb[57].mxu0 }
 0x1d8   : > { %v1613_v34 = vpop.f32.mrb[58].mxu0 }
 0x1d9   : > { %v3075_v38 = vadd.f32 %v4368_v3, %v3072_v59  ;;  %v3144_v40 = vmul.f32 %v4368_v3, %v4368_v3  ;;  %v4369_v23 = vadd.f32 %v1613_v34, %v5131_v15  ;;  %v4273_v0 = vpop.f32.mrb[59].mxu0 }
 0x1db   : > { %v3205_v43 = vadd.f32 %v3202_v60, %v3144_v40  ;;  %v3752_v35 = vpack.c.bf16 %v4369_v23, %v4368_v3  ;;  %v3076_v42 = vadd.f32 %v4369_v23, %v3075_v38  ;;  %v3145_v28 = vmul.f32 %v4369_v23, %v4369_v23 }
 0x1dd   : > { %3847 = vst [vmem:[%s5159_s29 + $0x70] sm:$0xff] %v3752_v35   ;;  %v3206_v9 = vadd.f32 %v3205_v43, %v3145_v28 }
 0x1de   : > { %v1024_v46 = vpop.f32.mrb[64].mxu1  ;;  %v1618_v2 = vpop.f32.mrb[60].mxu0 }
 0x1df   : > { %v4154_v47 = vpop.f32.mrb[65].mxu1  ;;  %v4370_v51 = vadd.f32 %v1618_v2, %v5140_v39  ;;  %v4276_v37 = vpop.f32.mrb[61].mxu0 }
 0x1e0   : > { %v1027_v25 = vpop.f32.mrb[66].mxu1  ;;  %v1621_v49 = vpop.f32.mrb[62].mxu0 }
 0x1e1   : > { %v4155_v6 = vpop.f32.mrb[67].mxu1  ;;  %v4371_v50 = vadd.f32 %v1621_v49, %v5143_v22  ;;  %v4277_v15 = vpop.f32.mrb[63].mxu0 }
 0x1e3   : > { %v3757_v36 = vpack.c.bf16 %v4371_v50, %v4370_v51 }
 0x1e5   : > { %3848 = vst [vmem:[%s5159_s29 + $0x78] sm:$0xff] %v3757_v36  }
 0x1e6   : > { %v1032_v55 = vpop.f32.mrb[68].mxu1  ;;  %v1626_v45 = vpop.f32.mrb[64].mxu0 }
 0x1e7   : > { %v4158_v56 = vpop.f32.mrb[69].mxu1  ;;  %v4372_v58 = vadd.f32 %v1626_v45, %v1024_v46  ;;  %v4280_v61 = vpop.f32.mrb[65].mxu0 }
 0x1e8   : > { %v1035_v8 = vpop.f32.mrb[70].mxu1  ;;  %v1629_v27 = vpop.f32.mrb[66].mxu0 }
 0x1e9   : > { %v4159_v62 = vpop.f32.mrb[71].mxu1  ;;  %v3079_v53 = vadd.f32 %v4372_v58, %v3076_v42  ;;  %v3148_v39 = vmul.f32 %v4372_v58, %v4372_v58  ;;  %v4373_v1 = vadd.f32 %v1629_v27, %v1027_v25  ;;  %v4281_v44 = vpop.f32.mrb[67].mxu0 }
 0x1eb   : > { %v3209_v11 = vadd.f32 %v3206_v9, %v3148_v39  ;;  %v3762_v4 = vpack.c.bf16 %v4373_v1, %v4372_v58  ;;  %v3080_v22 = vadd.f32 %v4373_v1, %v3079_v53  ;;  %v3149_v57 = vmul.f32 %v4373_v1, %v4373_v1 }
 0x1ed   : > { %3849 = vst [vmem:[%s5159_s29 + $0x80] sm:$0xff] %v3762_v4   ;;  %v3210_v5 = vadd.f32 %v3209_v11, %v3149_v57 }
 0x1ee   : > { %v1040_v29 = vpop.f32.mrb[72].mxu1  ;;  %v1634_v7 = vpop.f32.mrb[68].mxu0 }
 0x1ef   : > { %v4162_v48 = vpop.f32.mrb[73].mxu1  ;;  %v4374_v10 = vadd.f32 %v1634_v7, %v1032_v55  ;;  %v4284_v52 = vpop.f32.mrb[69].mxu0 }
 0x1f0   : > { %v1043_v13 = vpop.f32.mrb[74].mxu1  ;;  %v1637_v12 = vpop.f32.mrb[70].mxu0 }
 0x1f1   : > { %v4163_v14 = vpop.f32.mrb[75].mxu1  ;;  %v4375_v17 = vadd.f32 %v1637_v12, %v1035_v8  ;;  %v4285_v16 = vpop.f32.mrb[71].mxu0 }
 0x1f3   : > { %v3767_v19 = vpack.c.bf16 %v4375_v17, %v4374_v10 }
 0x1f5   : > { %3850 = vst [vmem:[%s5159_s29 + $0x88] sm:$0xff] %v3767_v19  }
 0x1f6   : > { %v1048_v31 = vpop.f32.mrb[76].mxu1  ;;  %v1642_v20 = vpop.f32.mrb[72].mxu0 }
 0x1f7   : > { %v4166_v59 = vpop.f32.mrb[77].mxu1  ;;  %v4376_v24 = vadd.f32 %v1642_v20, %v1040_v29  ;;  %v4288_v60 = vpop.f32.mrb[73].mxu0 }
 0x1f8   : > { %v1051_v18 = vpop.f32.mrb[78].mxu1  ;;  %v1645_v41 = vpop.f32.mrb[74].mxu0 }
 0x1f9   : > { %v4167_v63 = vpop.f32.mrb[79].mxu1  ;;  %v3083_v26 = vadd.f32 %v4376_v24, %v3080_v22  ;;  %v3152_v33 = vmul.f32 %v4376_v24, %v4376_v24  ;;  %v4377_v21 = vadd.f32 %v1645_v41, %v1043_v13  ;;  %v4289_v30 = vpop.f32.mrb[75].mxu0 }
 0x1fb   : > { %v3213_v54 = vadd.f32 %v3210_v5, %v3152_v33  ;;  %v3772_v3 = vpack.c.bf16 %v4377_v21, %v4376_v24  ;;  %v3084_v32 = vadd.f32 %v4377_v21, %v3083_v26  ;;  %v3153_v34 = vmul.f32 %v4377_v21, %v4377_v21 }
 0x1fd   : > { %3851 = vst [vmem:[%s5159_s29 + $0x90] sm:$0xff] %v3772_v3   ;;  %v3214_v38 = vadd.f32 %v3213_v54, %v3153_v34 }
 0x1fe   : > { %v1056_v40 = vpop.f32.mrb[80].mxu1  ;;  %v1650_v23 = vpop.f32.mrb[76].mxu0 }
 0x1ff   : > { %v4170_v0 = vpop.f32.mrb[81].mxu1  ;;  %v4378_v43 = vadd.f32 %v1650_v23, %v1048_v31  ;;  %v4292_v35 = vpop.f32.mrb[77].mxu0 }
 0x200   : > { %v1059_v42 = vpop.f32.mrb[82].mxu1  ;;  %v1653_v28 = vpop.f32.mrb[78].mxu0 }
 0x201   : > { %v4171_v9 = vpop.f32.mrb[83].mxu1  ;;  %v4379_v46 = vadd.f32 %v1653_v28, %v1051_v18  ;;  %v4293_v2 = vpop.f32.mrb[79].mxu0 }
 0x203   : > { %v3777_v47 = vpack.c.bf16 %v4379_v46, %v4378_v43 }
 0x205   : > { %3852 = vst [vmem:[%s5159_s29 + $0x98] sm:$0xff] %v3777_v47  }
 0x206   : > { %v1064_v51 = vpop.f32.mrb[84].mxu1  ;;  %v1658_v37 = vpop.f32.mrb[80].mxu0 }
 0x207   : > { %v4174_v25 = vpop.f32.mrb[85].mxu1  ;;  %v4380_v49 = vadd.f32 %v1658_v37, %v1056_v40  ;;  %v4296_v6 = vpop.f32.mrb[81].mxu0 }
 0x208   : > { %v1067_v50 = vpop.f32.mrb[86].mxu1  ;;  %v1661_v15 = vpop.f32.mrb[82].mxu0 }
 0x209   : > { %v4175_v36 = vpop.f32.mrb[87].mxu1  ;;  %v3087_v55 = vadd.f32 %v4380_v49, %v3084_v32  ;;  %v3156_v45 = vmul.f32 %v4380_v49, %v4380_v49  ;;  %v4381_v56 = vadd.f32 %v1661_v15, %v1059_v42  ;;  %v4297_v58 = vpop.f32.mrb[83].mxu0 }
 0x20b   : > { %v3217_v61 = vadd.f32 %v3214_v38, %v3156_v45  ;;  %v3782_v8 = vpack.c.bf16 %v4381_v56, %v4380_v49  ;;  %v3088_v27 = vadd.f32 %v4381_v56, %v3087_v55  ;;  %v3157_v62 = vmul.f32 %v4381_v56, %v4381_v56 }
 0x20d   : > { %3853 = vst [vmem:[%s5159_s29 + $0xa0] sm:$0xff] %v3782_v8   ;;  %v3218_v53 = vadd.f32 %v3217_v61, %v3157_v62 }
 0x20e   : > { %v1072_v39 = vpop.f32.mrb[88].mxu1  ;;  %v1666_v1 = vpop.f32.mrb[84].mxu0 }
 0x20f   : > { %v4178_v44 = vpop.f32.mrb[89].mxu1  ;;  %v4382_v11 = vadd.f32 %v1666_v1, %v1064_v51  ;;  %v4300_v4 = vpop.f32.mrb[85].mxu0 }
 0x210   : > { %v1075_v22 = vpop.f32.mrb[90].mxu1  ;;  %v1669_v57 = vpop.f32.mrb[86].mxu0 }
 0x211   : > { %v4179_v5 = vpop.f32.mrb[91].mxu1  ;;  %v4383_v29 = vadd.f32 %v1669_v57, %v1067_v50  ;;  %v4301_v7 = vpop.f32.mrb[87].mxu0 }
 0x213   : > { %v3787_v48 = vpack.c.bf16 %v4383_v29, %v4382_v11 }
 0x215   : > { %3854 = vst [vmem:[%s5159_s29 + $0xa8] sm:$0xff] %v3787_v48  }
 0x216   : > { %v1080_v10 = vpop.f32.mrb[92].mxu1  ;;  %v1674_v52 = vpop.f32.mrb[88].mxu0 }
 0x217   : > { %v4182_v13 = vpop.f32.mrb[93].mxu1  ;;  %v4384_v12 = vadd.f32 %v1674_v52, %v1072_v39  ;;  %v4304_v14 = vpop.f32.mrb[89].mxu0 }
 0x218   : > { %v1083_v17 = vpop.f32.mrb[94].mxu1  ;;  %v1677_v16 = vpop.f32.mrb[90].mxu0 }
 0x219   : > { %v4183_v19 = vpop.f32.mrb[95].mxu1  ;;  %v3091_v31 = vadd.f32 %v4384_v12, %v3088_v27  ;;  %v3160_v20 = vmul.f32 %v4384_v12, %v4384_v12  ;;  %v4385_v59 = vadd.f32 %v1677_v16, %v1075_v22  ;;  %v4305_v24 = vpop.f32.mrb[91].mxu0 }
 0x21b   : > { %v3221_v60 = vadd.f32 %v3218_v53, %v3160_v20  ;;  %v3792_v18 = vpack.c.bf16 %v4385_v59, %v4384_v12  ;;  %v3092_v41 = vadd.f32 %v4385_v59, %v3091_v31  ;;  %v3161_v63 = vmul.f32 %v4385_v59, %v4385_v59 }
 0x21d   : > { %3855 = vst [vmem:[%s5159_s29 + $0xb0] sm:$0xff] %v3792_v18   ;;  %v3222_v26 = vadd.f32 %v3221_v60, %v3161_v63 }
 0x21e   : > { %v1088_v33 = vpop.f32.mrb[96].mxu1  ;;  %v1682_v21 = vpop.f32.mrb[92].mxu0 }
 0x21f   : > { %v4186_v30 = vpop.f32.mrb[97].mxu1  ;;  %v4386_v54 = vadd.f32 %v1682_v21, %v1080_v10  ;;  %v4308_v3 = vpop.f32.mrb[93].mxu0 }
 0x220   : > { %v1091_v32 = vpop.f32.mrb[98].mxu1  ;;  %v1685_v34 = vpop.f32.mrb[94].mxu0 }
 0x221   : > { %v4187_v38 = vpop.f32.mrb[99].mxu1  ;;  %v4387_v40 = vadd.f32 %v1685_v34, %v1083_v17  ;;  %v4309_v23 = vpop.f32.mrb[95].mxu0 }
 0x223   : > { %v3797_v0 = vpack.c.bf16 %v4387_v40, %v4386_v54 }
 0x225   : > { %3856 = vst [vmem:[%s5159_s29 + $0xb8] sm:$0xff] %v3797_v0  }
 0x226   : > { %v1096_v43 = vpop.f32.mrb[100].mxu1  ;;  %v1690_v35 = vpop.f32.mrb[96].mxu0 }
 0x227   : > { %v4190_v42 = vpop.f32.mrb[101].mxu1  ;;  %v4388_v28 = vadd.f32 %v1690_v35, %v1088_v33  ;;  %v4312_v9 = vpop.f32.mrb[97].mxu0 }
 0x228   : > { %v1099_v46 = vpop.f32.mrb[102].mxu1  ;;  %v1693_v2 = vpop.f32.mrb[98].mxu0 }
 0x229   : > { %v4191_v47 = vpop.f32.mrb[103].mxu1  ;;  %v3095_v51 = vadd.f32 %v4388_v28, %v3092_v41  ;;  %v3164_v37 = vmul.f32 %v4388_v28, %v4388_v28  ;;  %v4389_v25 = vadd.f32 %v1693_v2, %v1091_v32  ;;  %v4313_v49 = vpop.f32.mrb[99].mxu0 }
 0x22b   : > { %v3225_v6 = vadd.f32 %v3222_v26, %v3164_v37  ;;  %v3802_v50 = vpack.c.bf16 %v4389_v25, %v4388_v28  ;;  %v3096_v15 = vadd.f32 %v4389_v25, %v3095_v51  ;;  %v3165_v36 = vmul.f32 %v4389_v25, %v4389_v25 }
 0x22d   : > { %3857 = vst [vmem:[%s5159_s29 + $0xc0] sm:$0xff] %v3802_v50   ;;  %v3226_v55 = vadd.f32 %v3225_v6, %v3165_v36 }
 0x22e   : > { %v1104_v45 = vpop.f32.mrb[104].mxu1  ;;  %v1698_v56 = vpop.f32.mrb[100].mxu0 }
 0x22f   : > { %v4194_v58 = vpop.f32.mrb[105].mxu1  ;;  %v4390_v61 = vadd.f32 %v1698_v56, %v1096_v43  ;;  %v4316_v8 = vpop.f32.mrb[101].mxu0 }
 0x230   : > { %v1107_v27 = vpop.f32.mrb[106].mxu1  ;;  %v1701_v62 = vpop.f32.mrb[102].mxu0 }
 0x231   : > { %v4195_v53 = vpop.f32.mrb[107].mxu1  ;;  %v4391_v39 = vadd.f32 %v1701_v62, %v1099_v46  ;;  %v4317_v1 = vpop.f32.mrb[103].mxu0 }
 0x233   : > { %v3807_v44 = vpack.c.bf16 %v4391_v39, %v4390_v61 }
 0x235   : > { %3858 = vst [vmem:[%s5159_s29 + $0xc8] sm:$0xff] %v3807_v44  }
 0x236   : > { %v1112_v11 = vpop.f32.mrb[108].mxu1  ;;  %v1706_v4 = vpop.f32.mrb[104].mxu0 }
 0x237   : > { %v4198_v22 = vpop.f32.mrb[109].mxu1  ;;  %v4392_v57 = vadd.f32 %v1706_v4, %v1104_v45  ;;  %v4320_v5 = vpop.f32.mrb[105].mxu0 }
 0x238   : > { %v1115_v29 = vpop.f32.mrb[110].mxu1  ;;  %v1709_v7 = vpop.f32.mrb[106].mxu0 }
 0x239   : > { %v4199_v48 = vpop.f32.mrb[111].mxu1  ;;  %v3099_v10 = vadd.f32 %v4392_v57, %v3096_v15  ;;  %v3168_v52 = vmul.f32 %v4392_v57, %v4392_v57  ;;  %v4393_v13 = vadd.f32 %v1709_v7, %v1107_v27  ;;  %v4321_v12 = vpop.f32.mrb[107].mxu0 }
 0x23b   : > { %v3229_v14 = vadd.f32 %v3226_v55, %v3168_v52  ;;  %v3812_v17 = vpack.c.bf16 %v4393_v13, %v4392_v57  ;;  %v3100_v16 = vadd.f32 %v4393_v13, %v3099_v10  ;;  %v3169_v19 = vmul.f32 %v4393_v13, %v4393_v13 }
 0x23d   : > { %3859 = vst [vmem:[%s5159_s29 + $0xd0] sm:$0xff] %v3812_v17   ;;  %v3230_v31 = vadd.f32 %v3229_v14, %v3169_v19 }
 0x23e   : > { %v1120_v20 = vpop.f32.mrb[112].mxu1  ;;  %v1714_v59 = vpop.f32.mrb[108].mxu0 }
 0x23f   : > { %v4202_v24 = vpop.f32.mrb[113].mxu1  ;;  %v4394_v60 = vadd.f32 %v1714_v59, %v1112_v11  ;;  %v4324_v18 = vpop.f32.mrb[109].mxu0 }
 0x240   : > { %v1123_v41 = vpop.f32.mrb[114].mxu1  ;;  %v1717_v63 = vpop.f32.mrb[110].mxu0 }
 0x241   : > { %v4203_v26 = vpop.f32.mrb[115].mxu1  ;;  %v4395_v33 = vadd.f32 %v1717_v63, %v1115_v29  ;;  %v4325_v21 = vpop.f32.mrb[111].mxu0 }
 0x243   : > { %v3817_v30 = vpack.c.bf16 %v4395_v33, %v4394_v60 }
 0x245   : > { %3860 = vst [vmem:[%s5159_s29 + $0xd8] sm:$0xff] %v3817_v30  }
 0x246   : > { %v1128_v54 = vpop.f32.mrb[116].mxu1  ;;  %v1722_v3 = vpop.f32.mrb[112].mxu0 }
 0x247   : > { %v4206_v32 = vpop.f32.mrb[117].mxu1  ;;  %v4396_v34 = vadd.f32 %v1722_v3, %v1120_v20  ;;  %v4328_v38 = vpop.f32.mrb[113].mxu0 }
 0x248   : > { %v1131_v40 = vpop.f32.mrb[118].mxu1  ;;  %v1725_v23 = vpop.f32.mrb[114].mxu0 }
 0x249   : > { %v4207_v0 = vpop.f32.mrb[119].mxu1  ;;  %v3103_v43 = vadd.f32 %v4396_v34, %v3100_v16  ;;  %v3172_v35 = vmul.f32 %v4396_v34, %v4396_v34  ;;  %v4397_v42 = vadd.f32 %v1725_v23, %v1123_v41  ;;  %v4329_v28 = vpop.f32.mrb[115].mxu0 }
 0x24b   : > { %v3233_v9 = vadd.f32 %v3230_v31, %v3172_v35  ;;  %v3822_v46 = vpack.c.bf16 %v4397_v42, %v4396_v34  ;;  %v3104_v2 = vadd.f32 %v4397_v42, %v3103_v43  ;;  %v3173_v47 = vmul.f32 %v4397_v42, %v4397_v42 }
 0x24d   : > { %3861 = vst [vmem:[%s5159_s29 + $0xe0] sm:$0xff] %v3822_v46   ;;  %v3234_v51 = vadd.f32 %v3233_v9, %v3173_v47 }
 0x24e   : > { %v1136_v37 = vpop.f32.mrb[120].mxu1 }
 0x24f   : > { %v1730_v25 = vpop.f32.mrb[116].mxu0  ;;  %v4210_v49 = vpop.f32.mrb[121].mxu1 }
 0x250   : > { %v4398_v6 = vadd.f32 %v1730_v25, %v1128_v54  ;;  %v4332_v50 = vpop.f32.mrb[117].mxu0  ;;  %v1139_v15 = vpop.f32.mrb[122].mxu1 }
 0x251   : > { %v1733_v36 = vpop.f32.mrb[118].mxu0  ;;  %v4211_v55 = vpop.f32.mrb[123].mxu1 }
 0x252   : > { %v4399_v45 = vadd.f32 %v1733_v36, %v1131_v40  ;;  %v4333_v56 = vpop.f32.mrb[119].mxu0 }
 0x254   : > { %v3827_v58 = vpack.c.bf16 %v4399_v45, %v4398_v6 }
 0x256   : > { %3862 = vst [vmem:[%s5159_s29 + $0xe8] sm:$0xff] %v3827_v58  }
 0x257   : > { %v1738_v61 = vpop.f32.mrb[120].mxu0 }
 0x258   : > { %v4400_v8 = vadd.f32 %v1738_v61, %v1136_v37  ;;  %v4336_v27 = vpop.f32.mrb[121].mxu0 }
 0x259   : > { %v1741_v62 = vpop.f32.mrb[122].mxu0 }
 0x25a   : > { %v3107_v53 = vadd.f32 %v4400_v8, %v3104_v2  ;;  %v3176_v39 = vmul.f32 %v4400_v8, %v4400_v8  ;;  %v4401_v1 = vadd.f32 %v1741_v62, %v1139_v15  ;;  %v4337_v44 = vpop.f32.mrb[123].mxu0 }
 0x25c   : > { %v3237_v11 = vadd.f32 %v3234_v51, %v3176_v39  ;;  %v3832_v4 = vpack.c.bf16 %v4401_v1, %v4400_v8  ;;  %v3108_v22 = vadd.f32 %v4401_v1, %v3107_v53  ;;  %v3177_v57 = vmul.f32 %v4401_v1, %v4401_v1 }
 0x25e   : > { %3863 = vst [vmem:[%s5159_s29 + $0xf0] sm:$0xff] %v3832_v4   ;;  %v3109_v5 = vrot.slane %v3108_v22, 4  ;;  %v3238_v29 = vadd.f32 %v3237_v11, %v3177_v57 }
 0x260   : > { %v3110_v7 = vadd.f32 %v3109_v5, %v3108_v22  ;;  %v3239_v48 = vrot.slane %v3238_v29, 4 }
 0x262   : > { %v3111_v10 = vrot.slane %v3110_v7, 2  ;;  %v3240_v52 = vadd.f32 %v3239_v48, %v3238_v29 }
 0x264   : > { %v3112_v13 = vadd.f32 %v3111_v10, %v3110_v7  ;;  %v3241_v12 = vrot.slane %v3240_v52, 2 }
 0x266   : > { %v3113_v14 = vrot.slane %v3112_v13, 1  ;;  %v3242_v17 = vadd.f32 %v3241_v12, %v3240_v52 }
 0x268   : > { %v3114_v16 = vadd.f32 %v3113_v14, %v3112_v13  ;;  %v3243_v19 = vrot.slane %v3242_v17, 1 }
 0x26a   : > { %3115 = vst [vmem:[%s226_s6] sm:$0x1] %v3114_v16  ;;  %v3244_v31 = vadd.f32 %v3243_v19, %v3242_v17 }
 0x26c   : > { %3245 = vst [vmem:[%s226_s6 + $0x1] sm:$0x1] %v3244_v31 }
 0x26d PF: > { %s14_s14 = sadd.s32 1, %s4643_s14   ;;  %s5262_s12 = smov %s4639_s13 }
 0x26e   : > { %p11_p5 = scmp.ge.s32.totalorder %s14_s14, 4   ;;  %s5263_s13 = smov %s5265_s15 }
 0x270   :  { %13 = sbr.rel (!%p11_p5) target bundleno = 2 (0x2), region = 75 }

</bundles_post_ra>
